<compile_context>
chip_gen: v7x
topology: tpu7x:2x2x1
jax: 0.10.0
libtpu: 0.0.40
codegen_flags: <defaults>
</compile_context>

<pallas_src>
import jax
import jax.numpy as jnp
from jax import lax
from jax.experimental import pallas as pl
from jax.experimental.pallas import tpu as pltpu


# ---------------------------------------------------------------------------
# Problem sizes (small, consistent with the module's __init__)
# ---------------------------------------------------------------------------
DIM_INPUT = 32              # Dim_input
DIM_OUTPUT = 512            # Dim_output
H2 = DIM_OUTPUT // 16       # MLP_2 output width = 32
MAX_NODE = 16               # max_node_num (small for this synthetic run)
FLAT_DIM = MAX_NODE * DIM_INPUT   # 512
NUM_PAIRS = 2               # number of graph pairs in the batch
LANES = 128                 # lane-padded scalar output width


def _pair_kernel(x1_ref, x2_ref,                 # (P, FLAT_DIM) f32 each
                 lim1_ref, lim2_ref,             # (P, 1) int32: n_nodes * D
                 w1bd_ref, b1t_ref,              # MLP_1 as block-diag (512,512), (1,512)
                 w2t_ref, b2_ref,                # MLP_2 (512,32), (1,32)
                 w3t_ref, b3_ref,                # MLP_3 (32,512), (1,512)
                 out_ref):                       # (P, 128) f32
    p, flat_dim = x1_ref.shape
    col = lax.broadcasted_iota(jnp.int32, (p, flat_dim), 1)

    def embed(x_flat, limit):
        # MLP_1 via block-diagonal W1: (P,512) @ blockdiag(W1^T x 16) is
        # numerically identical to per-node ReLU(x @ W1^T + b1) at the
        # flattened node-major layout.
        h = jnp.dot(x_flat, w1bd_ref[...],
                    preferred_element_type=jnp.float32) + b1t_ref[...]
        h = jnp.maximum(h, 0.0)
        # col < n*D == torch's MLP_2_weight[:, :n*D] slicing (node-major
        # flatten); also zeroes ReLU(b1) from zero-padded node rows.
        h = jnp.where(col < limit, h, 0.0)
        # MLP_2: (P,512) @ (512,32)
        z = jnp.dot(h, w2t_ref[...],
                    preferred_element_type=jnp.float32) + b2_ref[...]
        z = jnp.maximum(z, 0.0)
        # MLP_3: (P,32) @ (32,512)
        e = jnp.dot(z, w3t_ref[...],
                    preferred_element_type=jnp.float32) + b3_ref[...]
        e = jnp.maximum(e, 0.0)
        return e

    e1 = embed(x1_ref[...], lim1_ref[...])
    e2 = embed(x2_ref[...], lim2_ref[...])

    # CosineSimilarity(dim=1, eps=1e-6): dot / max(||e1||*||e2||, eps).
    # (Recent torch clamps each norm separately; differs only for ~zero
    # embeddings, e.g. fully dead ReLU.)
    dot12 = jnp.sum(e1 * e2, axis=1, keepdims=True)      # (P, 1)
    sq1 = jnp.sum(e1 * e1, axis=1, keepdims=True)
    sq2 = jnp.sum(e2 * e2, axis=1, keepdims=True)
    eps = jnp.float32(1e-6)
    cos = dot12 * lax.rsqrt(jnp.maximum(sq1 * sq2, eps * eps))   # EUP rsqrt

    # Single lane-dense store (lane-broadcast scores, 128-wide).
    out_ref[...] = jnp.broadcast_to(cos, out_ref.shape)


@jax.jit
def pairwise_scores_pallas(n1, n2, x1, x2, w1bd, b1t, w2t, b2, w3t, b3):
    """Returns per-pair cosine-similarity scores, shape (num_pairs, 1)."""
    num_pairs, max_node, d = x1.shape
    flat_dim = max_node * d

    # Free row-major flatten; no pair-axis pad, no x1/x2 concat (the two refs
    # are simply the two M-halves of the shared-weight matmul chain).
    x1f = x1.reshape(num_pairs, flat_dim)
    x2f = x2.reshape(num_pairs, flat_dim)
    lim1 = (n1.astype(jnp.int32) * d).reshape(num_pairs, 1)
    lim2 = (n2.astype(jnp.int32) * d).reshape(num_pairs, 1)

    vmem = pltpu.MemorySpace.VMEM
    out = pl.pallas_call(
        _pair_kernel,
        out_shape=jax.ShapeDtypeStruct((num_pairs, LANES), jnp.float32),
        in_specs=[pl.BlockSpec(memory_space=vmem)] * 10,
        out_specs=pl.BlockSpec(memory_space=vmem),
        # Gridless: overhead-bound at this size.  When batching many pairs per
        # call, add a grid over pair-blocks with
        # compiler_params=pltpu.CompilerParams(dimension_semantics=("parallel",))
        # so v7x splits the batch across both TensorCores.
    )(x1f, x2f, lim1, lim2, w1bd, b1t, w2t, b2, w3t, b3)

    return out[:, :1]


def pairwise_scores_ref(n1, n2, x1, x2, w1t, b1, w2t, b2, w3t, b3):
    """Pure-JAX per-pair reference for correctness checking."""
    num_pairs, max_node, d = x1.shape

    def embed(x, n):
        h = jnp.maximum(x @ w1t + b1, 0.0)
        row = jnp.arange(max_node)[:, None]
        h = jnp.where(row < n, h, 0.0)                   # == torch W2[:, :n*D] slice
        flat = h.reshape(1, max_node * d)
        z = jnp.maximum(flat @ w2t + b2, 0.0)
        e = jnp.maximum(z @ w3t + b3, 0.0)
        return e[0]

    scores = []
    for p in range(num_pairs):
        e1 = embed(x1[p], n1[p])
        e2 = embed(x2[p], n2[p])
        eps = 1e-6
        c = jnp.dot(e1, e2) / jnp.maximum(
            jnp.linalg.norm(e1) * jnp.linalg.norm(e2), eps)
        scores.append(c)
    return jnp.stack(scores)[:, None]


if __name__ == "__main__":
    key = jax.random.PRNGKey(0)
    keys = jax.random.split(key, 10)

    # Deterministic parameter init (shapes from __init__):
    #   MLP_1: Linear(D, D);  MLP_2_weight: (Dout//16, max_node*D);
    #   MLP_3: Linear(Dout//16, Dout).
    w1 = jax.random.normal(keys[0], (DIM_INPUT, DIM_INPUT), jnp.float32) * 0.1
    b1 = jax.random.normal(keys[1], (1, DIM_INPUT), jnp.float32) * 0.1
    w2 = jax.random.normal(keys[2], (H2, FLAT_DIM), jnp.float32) * 0.05
    b2 = jax.random.normal(keys[3], (1, H2), jnp.float32) * 0.1
    w3 = jax.random.normal(keys[4], (DIM_OUTPUT, H2), jnp.float32) * 0.1
    b3 = jax.random.normal(keys[5], (1, DIM_OUTPUT), jnp.float32) * 0.1
    # Pre-transpose to (in, out) so every kernel matmul is a plain X @ W.
    w1t, w2t, w3t = w1.T, w2.T, w3.T
    # MLP_1 folded into a block-diagonal (512,512) matmul on the flattened
    # (P, MAX_NODE*D) layout, with the bias lane-tiled to (1, 512).
    w1bd = jnp.kron(jnp.eye(MAX_NODE, dtype=jnp.float32), w1t)   # (512, 512)
    b1t = jnp.tile(b1, (1, MAX_NODE))                            # (1, 512)

    # Synthetic "already graclus-pooled" node features, zero-padded to MAX_NODE.
    # TODO(synk): graclus clustering + geo_nn.max_pool/avg_pool (data-dependent
    # greedy graph coarsening) has no clean Pallas equivalent; padded pooled
    # node features stand in as the kernel's input.
    n1 = jnp.array([10, 16], dtype=jnp.int32)   # real node counts, graph 1 of each pair
    n2 = jnp.array([12, 7], dtype=jnp.int32)    # real node counts, graph 2 of each pair
    x1 = jax.random.normal(keys[6], (NUM_PAIRS, MAX_NODE, DIM_INPUT), jnp.float32)
    x2 = jax.random.normal(keys[7], (NUM_PAIRS, MAX_NODE, DIM_INPUT), jnp.float32)
    row = jnp.arange(MAX_NODE)[None, :, None]
    x1 = jnp.where(row < n1[:, None, None], x1, 0.0)
    x2 = jnp.where(row < n2[:, None, None], x2, 0.0)

    # Kernel: batched per-pair embeddings + cosine similarity (single invocation).
    scores = pairwise_scores_pallas(n1, n2, x1, x2, w1bd, b1t, w2t, b2, w3t, b3)
    scores = jax.block_until_ready(scores)

    # Glue: MSE loss against synthetic "true" similarities (pair.get_ds_true).
    true = jax.random.uniform(keys[8], (NUM_PAIRS, 1), jnp.float32)
    loss = jnp.mean((scores - true) ** 2)
    loss = jax.block_until_ready(loss)

    # Correctness check against a pure-JAX per-pair reference.
    ref = pairwise_scores_ref(n1, n2, x1, x2, w1t, b1, w2t, b2, w3t, b3)
    assert jnp.allclose(scores, ref, rtol=1e-3, atol=1e-3), (scores, ref)

    print("KERNEL_OK")
</pallas_src>

<mosaic_0001>
module attributes {stable_mosaic.version = 11 : i64} {
  func.func @_pair_kernel(%arg0: memref<2x512xf32, #tpu.memory_space<vmem>>, %arg1: memref<2x512xf32, #tpu.memory_space<vmem>>, %arg2: memref<2x1xi32, #tpu.memory_space<vmem>>, %arg3: memref<2x1xi32, #tpu.memory_space<vmem>>, %arg4: memref<512x512xf32, #tpu.memory_space<vmem>>, %arg5: memref<1x512xf32, #tpu.memory_space<vmem>>, %arg6: memref<512x32xf32, #tpu.memory_space<vmem>>, %arg7: memref<1x32xf32, #tpu.memory_space<vmem>>, %arg8: memref<32x512xf32, #tpu.memory_space<vmem>>, %arg9: memref<1x512xf32, #tpu.memory_space<vmem>>, %arg10: memref<2x128xf32, #tpu.memory_space<vmem>>) attributes {dimension_semantics = [], scalar_prefetch = 0 : i64, scratch_operands = 0 : i64, tpu.core_type = #tpu.core_type<tc>} {
    %0 = tpu.iota {dimensions = array<i32: 1>} : vector<2x512xi32>
    %c0 = arith.constant 0 : index
    %c0_0 = arith.constant 0 : index
    %1 = vector.load %arg0[%c0, %c0_0] : memref<2x512xf32, #tpu.memory_space<vmem>>, vector<2x512xf32>
    %c0_1 = arith.constant 0 : index
    %c0_2 = arith.constant 0 : index
    %2 = vector.load %arg2[%c0_1, %c0_2] : memref<2x1xi32, #tpu.memory_space<vmem>>, vector<2x1xi32>
    %c0_3 = arith.constant 0 : index
    %c0_4 = arith.constant 0 : index
    %3 = vector.load %arg4[%c0_3, %c0_4] : memref<512x512xf32, #tpu.memory_space<vmem>>, vector<512x512xf32>
    %cst = arith.constant dense<0.000000e+00> : vector<2x512xf32>
    %4 = tpu.matmul %1, %3, %cst {dimension_numbers = #tpu.dot_dimension_numbers<[1], [0], [0], [1], [0, 0, 1, 1], [], []>} : vector<2x512xf32>, vector<512x512xf32>, vector<2x512xf32> -> vector<2x512xf32>
    %c0_5 = arith.constant 0 : index
    %c0_6 = arith.constant 0 : index
    %5 = vector.load %arg5[%c0_5, %c0_6] : memref<1x512xf32, #tpu.memory_space<vmem>>, vector<1x512xf32>
    %6 = vector.broadcast %5 : vector<1x512xf32> to vector<2x512xf32>
    %7 = arith.addf %4, %6 : vector<2x512xf32>
    %cst_7 = arith.constant 0.000000e+00 : f32
    %8 = vector.broadcast %cst_7 : f32 to vector<2x512xf32>
    %9 = arith.maximumf %7, %8 : vector<2x512xf32>
    %10 = vector.broadcast %2 : vector<2x1xi32> to vector<2x512xi32>
    %11 = arith.cmpi slt, %0, %10 : vector<2x512xi32>
    %cst_8 = arith.constant 0.000000e+00 : f32
    %12 = vector.broadcast %cst_8 : f32 to vector<2x512xf32>
    %13 = arith.select %11, %9, %12 : vector<2x512xi1>, vector<2x512xf32>
    %c0_9 = arith.constant 0 : index
    %c0_10 = arith.constant 0 : index
    %14 = vector.load %arg6[%c0_9, %c0_10] : memref<512x32xf32, #tpu.memory_space<vmem>>, vector<512x32xf32>
    %cst_11 = arith.constant dense<0.000000e+00> : vector<2x32xf32>
    %15 = tpu.matmul %13, %14, %cst_11 {dimension_numbers = #tpu.dot_dimension_numbers<[1], [0], [0], [1], [0, 0, 1, 1], [], []>} : vector<2x512xf32>, vector<512x32xf32>, vector<2x32xf32> -> vector<2x32xf32>
    %c0_12 = arith.constant 0 : index
    %c0_13 = arith.constant 0 : index
    %16 = vector.load %arg7[%c0_12, %c0_13] : memref<1x32xf32, #tpu.memory_space<vmem>>, vector<1x32xf32>
    %17 = vector.broadcast %16 : vector<1x32xf32> to vector<2x32xf32>
    %18 = arith.addf %15, %17 : vector<2x32xf32>
    %cst_14 = arith.constant 0.000000e+00 : f32
    %19 = vector.broadcast %cst_14 : f32 to vector<2x32xf32>
    %20 = arith.maximumf %18, %19 : vector<2x32xf32>
    %c0_15 = arith.constant 0 : index
    %c0_16 = arith.constant 0 : index
    %21 = vector.load %arg8[%c0_15, %c0_16] : memref<32x512xf32, #tpu.memory_space<vmem>>, vector<32x512xf32>
    %cst_17 = arith.constant dense<0.000000e+00> : vector<2x512xf32>
    %22 = tpu.matmul %20, %21, %cst_17 {dimension_numbers = #tpu.dot_dimension_numbers<[1], [0], [0], [1], [0, 0, 1, 1], [], []>} : vector<2x32xf32>, vector<32x512xf32>, vector<2x512xf32> -> vector<2x512xf32>
    %c0_18 = arith.constant 0 : index
    %c0_19 = arith.constant 0 : index
    %23 = vector.load %arg9[%c0_18, %c0_19] : memref<1x512xf32, #tpu.memory_space<vmem>>, vector<1x512xf32>
    %24 = vector.broadcast %23 : vector<1x512xf32> to vector<2x512xf32>
    %25 = arith.addf %22, %24 : vector<2x512xf32>
    %cst_20 = arith.constant 0.000000e+00 : f32
    %26 = vector.broadcast %cst_20 : f32 to vector<2x512xf32>
    %27 = arith.maximumf %25, %26 : vector<2x512xf32>
    %c0_21 = arith.constant 0 : index
    %c0_22 = arith.constant 0 : index
    %28 = vector.load %arg1[%c0_21, %c0_22] : memref<2x512xf32, #tpu.memory_space<vmem>>, vector<2x512xf32>
    %c0_23 = arith.constant 0 : index
    %c0_24 = arith.constant 0 : index
    %29 = vector.load %arg3[%c0_23, %c0_24] : memref<2x1xi32, #tpu.memory_space<vmem>>, vector<2x1xi32>
    %c0_25 = arith.constant 0 : index
    %c0_26 = arith.constant 0 : index
    %30 = vector.load %arg4[%c0_25, %c0_26] : memref<512x512xf32, #tpu.memory_space<vmem>>, vector<512x512xf32>
    %cst_27 = arith.constant dense<0.000000e+00> : vector<2x512xf32>
    %31 = tpu.matmul %28, %30, %cst_27 {dimension_numbers = #tpu.dot_dimension_numbers<[1], [0], [0], [1], [0, 0, 1, 1], [], []>} : vector<2x512xf32>, vector<512x512xf32>, vector<2x512xf32> -> vector<2x512xf32>
    %c0_28 = arith.constant 0 : index
    %c0_29 = arith.constant 0 : index
    %32 = vector.load %arg5[%c0_28, %c0_29] : memref<1x512xf32, #tpu.memory_space<vmem>>, vector<1x512xf32>
    %33 = vector.broadcast %32 : vector<1x512xf32> to vector<2x512xf32>
    %34 = arith.addf %31, %33 : vector<2x512xf32>
    %cst_30 = arith.constant 0.000000e+00 : f32
    %35 = vector.broadcast %cst_30 : f32 to vector<2x512xf32>
    %36 = arith.maximumf %34, %35 : vector<2x512xf32>
    %37 = vector.broadcast %29 : vector<2x1xi32> to vector<2x512xi32>
    %38 = arith.cmpi slt, %0, %37 : vector<2x512xi32>
    %cst_31 = arith.constant 0.000000e+00 : f32
    %39 = vector.broadcast %cst_31 : f32 to vector<2x512xf32>
    %40 = arith.select %38, %36, %39 : vector<2x512xi1>, vector<2x512xf32>
    %c0_32 = arith.constant 0 : index
    %c0_33 = arith.constant 0 : index
    %41 = vector.load %arg6[%c0_32, %c0_33] : memref<512x32xf32, #tpu.memory_space<vmem>>, vector<512x32xf32>
    %cst_34 = arith.constant dense<0.000000e+00> : vector<2x32xf32>
    %42 = tpu.matmul %40, %41, %cst_34 {dimension_numbers = #tpu.dot_dimension_numbers<[1], [0], [0], [1], [0, 0, 1, 1], [], []>} : vector<2x512xf32>, vector<512x32xf32>, vector<2x32xf32> -> vector<2x32xf32>
    %c0_35 = arith.constant 0 : index
    %c0_36 = arith.constant 0 : index
    %43 = vector.load %arg7[%c0_35, %c0_36] : memref<1x32xf32, #tpu.memory_space<vmem>>, vector<1x32xf32>
    %44 = vector.broadcast %43 : vector<1x32xf32> to vector<2x32xf32>
    %45 = arith.addf %42, %44 : vector<2x32xf32>
    %cst_37 = arith.constant 0.000000e+00 : f32
    %46 = vector.broadcast %cst_37 : f32 to vector<2x32xf32>
    %47 = arith.maximumf %45, %46 : vector<2x32xf32>
    %c0_38 = arith.constant 0 : index
    %c0_39 = arith.constant 0 : index
    %48 = vector.load %arg8[%c0_38, %c0_39] : memref<32x512xf32, #tpu.memory_space<vmem>>, vector<32x512xf32>
    %cst_40 = arith.constant dense<0.000000e+00> : vector<2x512xf32>
    %49 = tpu.matmul %47, %48, %cst_40 {dimension_numbers = #tpu.dot_dimension_numbers<[1], [0], [0], [1], [0, 0, 1, 1], [], []>} : vector<2x32xf32>, vector<32x512xf32>, vector<2x512xf32> -> vector<2x512xf32>
    %c0_41 = arith.constant 0 : index
    %c0_42 = arith.constant 0 : index
    %50 = vector.load %arg9[%c0_41, %c0_42] : memref<1x512xf32, #tpu.memory_space<vmem>>, vector<1x512xf32>
    %51 = vector.broadcast %50 : vector<1x512xf32> to vector<2x512xf32>
    %52 = arith.addf %49, %51 : vector<2x512xf32>
    %cst_43 = arith.constant 0.000000e+00 : f32
    %53 = vector.broadcast %cst_43 : f32 to vector<2x512xf32>
    %54 = arith.maximumf %52, %53 : vector<2x512xf32>
    %55 = arith.mulf %27, %54 : vector<2x512xf32>
    %cst_44 = arith.constant dense<0.000000e+00> : vector<2xf32>
    %56 = vector.multi_reduction <add>, %55, %cst_44 [1] : vector<2x512xf32> to vector<2xf32>
    %57 = vector.shape_cast %56 : vector<2xf32> to vector<2x1xf32>
    %58 = arith.mulf %27, %27 : vector<2x512xf32>
    %cst_45 = arith.constant dense<0.000000e+00> : vector<2xf32>
    %59 = vector.multi_reduction <add>, %58, %cst_45 [1] : vector<2x512xf32> to vector<2xf32>
    %60 = vector.shape_cast %59 : vector<2xf32> to vector<2x1xf32>
    %61 = arith.mulf %54, %54 : vector<2x512xf32>
    %cst_46 = arith.constant dense<0.000000e+00> : vector<2xf32>
    %62 = vector.multi_reduction <add>, %61, %cst_46 [1] : vector<2x512xf32> to vector<2xf32>
    %63 = vector.shape_cast %62 : vector<2xf32> to vector<2x1xf32>
    %64 = arith.mulf %60, %63 : vector<2x1xf32>
    %cst_47 = arith.constant 9.99999997E-7 : f32
    %cst_48 = arith.constant 9.99999997E-7 : f32
    %65 = arith.mulf %cst_47, %cst_48 : f32
    %66 = vector.broadcast %65 : f32 to vector<2x1xf32>
    %67 = arith.maximumf %64, %66 : vector<2x1xf32>
    %68 = math.rsqrt %67 : vector<2x1xf32>
    %69 = arith.mulf %57, %68 : vector<2x1xf32>
    %70 = vector.shape_cast %69 : vector<2x1xf32> to vector<2x1xf32>
    %71 = vector.broadcast %70 : vector<2x1xf32> to vector<2x128xf32>
    %c0_49 = arith.constant 0 : index
    %c0_50 = arith.constant 0 : index
    %72 = vector.load %arg10[%c0_49, %c0_50] : memref<2x128xf32, #tpu.memory_space<vmem>>, vector<2x128xf32>
    tpu.vector_store %arg10[%c0_49, %c0_50], %71 {strides = array<i32>} : memref<2x128xf32, #tpu.memory_space<vmem>>, vector<2x128xf32>,
    return
  }
}

</mosaic_0001>

<bundles_post_ra>
// kernel: pairwise_scores_pallas.1
= control target key start
LH: loop header
LB: loop body
LE: loop exit
PB: predicated region body
PF: predicated region fallthrough
CT: control target
= control target key end

     0   :  { %15 = vsyncpa [#allocation3], 0  ;;  %s2594_s13 = smov [#allocation2]   ;;  %s3763_s0 = inlined_call_operand.vmem [shape: f32[2,512], index: 0, kind: input, shape index: {}]   ;;  %s3764_s1 = inlined_call_operand.vmem [shape: f32[2,512], index: 1, kind: input, shape index: {}]   ;;  %s3765_s2 = inlined_call_operand.vmem [shape: s32[2,1], index: 2, kind: input, shape index: {}]   ;;  %s3766_s3 = inlined_call_operand.vmem [shape: s32[2,1], index: 3, kind: input, shape index: {}]   ;;  %s3767_s4 = inlined_call_operand.hbm [shape: f32[512,512], index: 4, kind: input, shape index: {}]   ;;  %s3768_s5 = inlined_call_operand.vmem [shape: f32[1,512], index: 5, kind: input, shape index: {}]   ;;  %s3769_s6 = inlined_call_operand.vmem [shape: f32[512,32], index: 6, kind: input, shape index: {}]   ;;  %s3770_s7 = inlined_call_operand.vmem [shape: f32[1,32], index: 7, kind: input, shape index: {}]   ;;  %s3771_s8 = inlined_call_operand.vmem [shape: f32[32,512], index: 8, kind: input, shape index: {}]   ;;  %s3772_s9 = inlined_call_operand.vmem [shape: f32[1,512], index: 9, kind: input, shape index: {}]   ;;  %s3773_s10 = inlined_call_operand.vmem [shape: f32[2,128], index: 10, kind: output, shape index: {}]  }
   0x1   :  { %s29_s14 = sshll.u32 %s2594_s13, 4  ;;  %s2570_s17 = scalar_lea.hbm %s3767_s4, 32768  ;;  %s30_s14 = int_to_ptr.vmem [resolvable:$true] %s29_s14 }
   0x2   :  { %p2571_p0 = scmp.ne.s32.totalorder %s3767_s4, %s2570_s17  ;;  %p2574_p1 = scmp.lt.u32.totalorder %s2570_s17, %s3767_s4 }
   0x4   :  { %p2576_p2 = pnand %p2574_p1, %p2571_p0 }
   0x6   :  { %2579 = shalt.err (!%p2576_p2)
}
   0x7   :  { %s2580_s22 = scalar_lea.vmem %s30_s14, 32768  ;;  %p2585_p4 = scmp.lt.s32.totalorder %s30_s14, %s30_s14 }
   0x8   :  { %p2581_p3 = scmp.ne.s32.totalorder %s30_s14, %s2580_s22  ;;  %p2586_p5 = scmp.lt.s32.totalorder %s2580_s22, %s2580_s22 }
   0xa   :  { %p2587_p6 = por %p2586_p5, %p2585_p4 }
   0xc   :  { %p2588_p7 = pnand %p2587_p6, %p2581_p3 }
   0xe   :  { %2591 = shalt.err (!%p2588_p7)
}
   0xf   :  { %s2595_s23 = smov 512   ;;  %s2596_s24 = smov 32  }
  0x10   :  { %35 = dma.hbm_to_vmem [thread:$0]  %s3767_s4, 32768, %s30_s14, [#allocation3], %s2595_s23, %s2595_s23, %s2596_s24  }
  0x11   :  { %2592 = dma.done.wait [#allocation3], 32768  }
  0x12   :  { %2593 = vsyncadd [#allocation3], 4294934528  ;;  %v57_v0 = vld [vmem:[#allocation2 + $0x8] sm:$0xff]  ;;  %v59_v2 = vld [vmem:[#allocation2 + $0x18] sm:$0xff]  ;;  %v2597_v25 = vmov 0   ;;  %vm905_vm4 = vcmask 261120  }
  0x13   :  { %v61_v1 = vld [vmem:[#allocation2 + $0x28] sm:$0xff]  ;;  %v63_v4 = vld [vmem:[#allocation2 + $0x38] sm:$0xff]  ;;  %v56_v5 = vld [vmem:[#allocation2] sm:$0xff]  ;;  %2565 = vset.pattern.permute.xlu0 %v2597_v25  ;;  %vm1672_vm5 = vcmask 1041408  }
  0x14   :  { %v2667_v3 = vpack.c.bf16 %v61_v1, %v57_v0  ;;  %v60_v6 = vld [vmem:[#allocation2 + $0x20] sm:$0xff]  ;;  %v2669_v7 = vpack.c.bf16 %v63_v4, %v59_v2  ;;  %v58_v9 = vld [vmem:[#allocation2 + $0x10] sm:$0xff]  ;;  %v65_v11 = vld [vmem:[#allocation2 + $0x48] sm:$0xff] }
  0x15   :  { %v2671_v8 = vpack.c.bf16 %v60_v6, %v56_v5  ;;  %v62_v10 = vld [vmem:[#allocation2 + $0x30] sm:$0xff]  ;;  %v69_v13 = vld [vmem:[#allocation2 + $0x68] sm:$0xff]  ;;  %v67_v14 = vld [vmem:[#allocation2 + $0x58] sm:$0xff] }
  0x16   :  { %1872 = vmatprep.subr.bf16.mxu0 %v2667_v3  ;;  %v2674_v12 = vpack.c.bf16 %v62_v10, %v58_v9  ;;  %v71_v15 = vld [vmem:[#allocation2 + $0x78] sm:$0xff]  ;;  %2000 = vmatprep.subr.bf16.mxu1 %v2669_v7  ;;  %v2678_v16 = vpack.c.bf16 %v69_v13, %v65_v11  ;;  %v64_v18 = vld [vmem:[#allocation2 + $0x40] sm:$0xff]  ;;  %v66_v20 = vld [vmem:[#allocation2 + $0x50] sm:$0xff] }
  0x17   :  { %1874 = vmatpush1.bf16.msra.mxu0 %v2671_v8  ;;  %v2680_v17 = vpack.c.bf16 %v71_v15, %v67_v14  ;;  %v68_v19 = vld [vmem:[#allocation2 + $0x60] sm:$0xff]  ;;  %v70_v22 = vld [vmem:[#allocation2 + $0x70] sm:$0xff]  ;;  %v73_v23 = vld [vmem:[#allocation2 + $0x88] sm:$0xff] }
  0x18   :  { %2002 = vmatpush1.bf16.msra.mxu1 %v2674_v12  ;;  %v2683_v21 = vpack.c.bf16 %v68_v19, %v64_v18  ;;  %v77_v24 = vld [vmem:[#allocation2 + $0xa8] sm:$0xff]  ;;  %1876 = vmatprep.subr.bf16.mxu0 %v2678_v16  ;;  %v2687_v26 = vpack.c.bf16 %v70_v22, %v66_v20  ;;  %v75_v28 = vld [vmem:[#allocation2 + $0x98] sm:$0xff]  ;;  %v72_v30 = vld [vmem:[#allocation2 + $0x80] sm:$0xff] }
  0x19   :  { %2004 = vmatprep.subr.bf16.mxu1 %v2680_v17  ;;  %v2689_v27 = vpack.c.bf16 %v77_v24, %v73_v23  ;;  %v79_v29 = vld [vmem:[#allocation2 + $0xb8] sm:$0xff]  ;;  %v76_v32 = vld [vmem:[#allocation2 + $0xa0] sm:$0xff]  ;;  %v74_v33 = vld [vmem:[#allocation2 + $0x90] sm:$0xff] }
  0x1a   :  { %v2691_v31 = vpack.c.bf16 %v79_v29, %v75_v28  ;;  %v78_v34 = vld [vmem:[#allocation2 + $0xb0] sm:$0xff]  ;;  %v2694_v35 = vpack.c.bf16 %v76_v32, %v72_v30  ;;  %v81_v36 = vld [vmem:[#allocation2 + $0xc8] sm:$0xff]  ;;  %v83_v38 = vld [vmem:[#allocation2 + $0xd8] sm:$0xff] }
  0x1b   :  { %1878 = vmatpush1.bf16.msra.mxu0 %v2683_v21  ;;  %v85_v37 = vld [vmem:[#allocation2 + $0xe8] sm:$0xff]  ;;  %v2698_v39 = vpack.c.bf16 %v78_v34, %v74_v33  ;;  %v87_v41 = vld [vmem:[#allocation2 + $0xf8] sm:$0xff]  ;;  %v80_v42 = vld [vmem:[#allocation2 + $0xc0] sm:$0xff] }
  0x1c   :  { %2006 = vmatpush1.bf16.msra.mxu1 %v2687_v26  ;;  %1880 = vmatprep.subr.bf16.mxu0 %v2689_v27  ;;  %v2700_v40 = vpack.c.bf16 %v85_v37, %v81_v36  ;;  %v84_v43 = vld [vmem:[#allocation2 + $0xe0] sm:$0xff]  ;;  %v2703_v44 = vpack.c.bf16 %v87_v41, %v83_v38  ;;  %v82_v45 = vld [vmem:[#allocation2 + $0xd0] sm:$0xff]  ;;  %v89_v47 = vld [vmem:[#allocation2 + $0x108] sm:$0xff] }
  0x1d   :  { %2008 = vmatprep.subr.bf16.mxu1 %v2691_v31  ;;  %v86_v46 = vld [vmem:[#allocation2 + $0xf0] sm:$0xff]  ;;  %v93_v48 = vld [vmem:[#allocation2 + $0x128] sm:$0xff]  ;;  %v91_v49 = vld [vmem:[#allocation2 + $0x118] sm:$0xff]  ;;  %v2706_v51 = vpack.c.bf16 %v84_v43, %v80_v42 }
  0x1e   :  { %v95_v50 = vld [vmem:[#allocation2 + $0x138] sm:$0xff]  ;;  %v2710_v52 = vpack.c.bf16 %v86_v46, %v82_v45  ;;  %v2712_v53 = vpack.c.bf16 %v93_v48, %v89_v47  ;;  %v88_v54 = vld [vmem:[#allocation2 + $0x100] sm:$0xff]  ;;  %v90_v56 = vld [vmem:[#allocation2 + $0x110] sm:$0xff] }
  0x1f   :  { %1882 = vmatpush1.bf16.msra.mxu0 %v2694_v35  ;;  %v92_v55 = vld [vmem:[#allocation2 + $0x120] sm:$0xff]  ;;  %v2715_v57 = vpack.c.bf16 %v95_v50, %v91_v49  ;;  %v94_v58 = vld [vmem:[#allocation2 + $0x130] sm:$0xff]  ;;  %v97_v59 = vld [vmem:[#allocation2 + $0x148] sm:$0xff] }
  0x20   :  { %2010 = vmatpush1.bf16.msra.mxu1 %v2698_v39  ;;  %1884 = vmatprep.subr.bf16.mxu0 %v2700_v40  ;;  %v101_v60 = vld [vmem:[#allocation2 + $0x168] sm:$0xff]  ;;  %v99_v61 = vld [vmem:[#allocation2 + $0x158] sm:$0xff]  ;;  %v2718_v63 = vpack.c.bf16 %v92_v55, %v88_v54  ;;  %v2722_v0 = vpack.c.bf16 %v94_v58, %v90_v56  ;;  %v96_v2 = vld [vmem:[#allocation2 + $0x140] sm:$0xff] }
  0x21   :  { %2012 = vmatprep.subr.bf16.mxu1 %v2703_v44  ;;  %v103_v62 = vld [vmem:[#allocation2 + $0x178] sm:$0xff]  ;;  %v2724_v1 = vpack.c.bf16 %v101_v60, %v97_v59  ;;  %v100_v4 = vld [vmem:[#allocation2 + $0x160] sm:$0xff]  ;;  %v98_v5 = vld [vmem:[#allocation2 + $0x150] sm:$0xff] }
  0x22   :  { %v2727_v6 = vpack.c.bf16 %v103_v62, %v99_v61  ;;  %v102_v9 = vld [vmem:[#allocation2 + $0x170] sm:$0xff]  ;;  %v105_v10 = vld [vmem:[#allocation2 + $0x188] sm:$0xff]  ;;  %v107_v13 = vld [vmem:[#allocation2 + $0x198] sm:$0xff]  ;;  %v2730_v15 = vpack.c.bf16 %v100_v4, %v96_v2 }
  0x23   :  { %1886 = vmatpush1.bf16.msra.mxu0 %v2706_v51  ;;  %v109_v11 = vld [vmem:[#allocation2 + $0x1a8] sm:$0xff]  ;;  %v111_v14 = vld [vmem:[#allocation2 + $0x1b8] sm:$0xff]  ;;  %v2734_v18 = vpack.c.bf16 %v102_v9, %v98_v5  ;;  %v104_v20 = vld [vmem:[#allocation2 + $0x180] sm:$0xff]  ;;  %v3774_v5 = vlaneseq  ;;  %v2598_v9 = vmov 1983009808  }
  0x24   :  { %2014 = vmatpush1.bf16.msra.mxu1 %v2710_v52  ;;  %1888 = vmatprep.subr.bf16.mxu0 %v2712_v53  ;;  %v2736_v19 = vpack.c.bf16 %v109_v11, %v105_v10  ;;  %v108_v22 = vld [vmem:[#allocation2 + $0x1a0] sm:$0xff]  ;;  %v106_v23 = vld [vmem:[#allocation2 + $0x190] sm:$0xff]  ;;  %v2739_v24 = vpack.c.bf16 %v111_v14, %v107_v13  ;;  %v113_v28 = vld [vmem:[#allocation2 + $0x1c8] sm:$0xff]  ;;  %v337_v10 = vunpack.c.l.s4 %v2598_v9 }
  0x25   :  { %2016 = vmatprep.subr.bf16.mxu1 %v2715_v57  ;;  %v110_v25 = vld [vmem:[#allocation2 + $0x1b0] sm:$0xff]  ;;  %v117_v29 = vld [vmem:[#allocation2 + $0x1e8] sm:$0xff]  ;;  %v115_v30 = vld [vmem:[#allocation2 + $0x1d8] sm:$0xff]  ;;  %v2742_v33 = vpack.c.bf16 %v108_v22, %v104_v20 }
  0x26   :  { %v119_v32 = vld [vmem:[#allocation2 + $0x1f8] sm:$0xff]  ;;  %v2746_v34 = vpack.c.bf16 %v110_v25, %v106_v23  ;;  %v2748_v36 = vpack.c.bf16 %v117_v29, %v113_v28  ;;  %v112_v37 = vld [vmem:[#allocation2 + $0x1c0] sm:$0xff]  ;;  %v114_v41 = vld [vmem:[#allocation2 + $0x1d0] sm:$0xff] }
  0x27   :  { %1890 = vmatpush1.bf16.msra.mxu0 %v2718_v63  ;;  %v116_v38 = vld [vmem:[#allocation2 + $0x1e0] sm:$0xff]  ;;  %v2751_v42 = vpack.c.bf16 %v119_v32, %v115_v30  ;;  %v118_v43 = vld [vmem:[#allocation2 + $0x1f0] sm:$0xff]  ;;  %v121_v45 = vld [vmem:[#allocation2 + $0x208] sm:$0xff] }
  0x28   :  { %2018 = vmatpush1.bf16.msra.mxu1 %v2722_v0  ;;  %1892 = vmatprep.subr.bf16.mxu0 %v2724_v1  ;;  %v125_v46 = vld [vmem:[#allocation2 + $0x228] sm:$0xff]  ;;  %v123_v47 = vld [vmem:[#allocation2 + $0x218] sm:$0xff]  ;;  %v2754_v49 = vpack.c.bf16 %v116_v38, %v112_v37  ;;  %v2758_v50 = vpack.c.bf16 %v118_v43, %v114_v41  ;;  %v120_v55 = vld [vmem:[#allocation2 + $0x200] sm:$0xff]  ;;  %v2778_v38 = vshrl.u32 %v3774_v5, 7  ;;  %v338_v41 = vunpack.c.0.s8 %v337_v10 }
  0x29   :  { %2020 = vmatprep.subr.bf16.mxu1 %v2727_v6  ;;  %v127_v48 = vld [vmem:[#allocation2 + $0x238] sm:$0xff]  ;;  %v2760_v54 = vpack.c.bf16 %v125_v46, %v121_v45  ;;  %v124_v56 = vld [vmem:[#allocation2 + $0x220] sm:$0xff]  ;;  %v122_v58 = vld [vmem:[#allocation2 + $0x210] sm:$0xff] }
  0x2a   :  { %v2763_v59 = vpack.c.bf16 %v127_v48, %v123_v47  ;;  %v126_v60 = vld [vmem:[#allocation2 + $0x230] sm:$0xff]  ;;  %v129_v61 = vld [vmem:[#allocation2 + $0x248] sm:$0xff]  ;;  %v131_v2 = vld [vmem:[#allocation2 + $0x258] sm:$0xff]  ;;  %v2766_v11 = vpack.c.bf16 %v124_v56, %v120_v55  ;;  %3907 = vst [vmem:[#allocation5_spill] sm:$0xff] %v2778_v38 }
  0x2b   :  { %1894 = vmatpush1.bf16.msra.mxu0 %v2730_v15  ;;  %v133_v62 = vld [vmem:[#allocation2 + $0x268] sm:$0xff]  ;;  %v135_v4 = vld [vmem:[#allocation2 + $0x278] sm:$0xff]  ;;  %v2770_v13 = vpack.c.bf16 %v126_v60, %v122_v58  ;;  %v128_v20 = vld [vmem:[#allocation2 + $0x240] sm:$0xff] }
  0x2c   :  { %2022 = vmatpush1.bf16.msra.mxu1 %v2734_v18  ;;  %1896 = vmatprep.subr.bf16.mxu0 %v2736_v19  ;;  %v2772_v14 = vpack.c.bf16 %v133_v62, %v129_v61  ;;  %v132_v22 = vld [vmem:[#allocation2 + $0x260] sm:$0xff]  ;;  %v130_v23 = vld [vmem:[#allocation2 + $0x250] sm:$0xff]  ;;  %v2775_v25 = vpack.c.bf16 %v135_v4, %v131_v2  ;;  %v137_v29 = vld [vmem:[#allocation2 + $0x288] sm:$0xff]  ;;  %v2793_v4 = vsub.s32 %v338_v41, %v2778_v38 }
  0x2d   :  { %2024 = vmatprep.subr.bf16.mxu1 %v2739_v24  ;;  %v134_v28 = vld [vmem:[#allocation2 + $0x270] sm:$0xff]  ;;  %v141_v30 = vld [vmem:[#allocation2 + $0x2a8] sm:$0xff]  ;;  %v139_v32 = vld [vmem:[#allocation2 + $0x298] sm:$0xff]  ;;  %v2781_v43 = vpack.c.bf16 %v132_v22, %v128_v20 }
  0x2e   :  { %v143_v37 = vld [vmem:[#allocation2 + $0x2b8] sm:$0xff]  ;;  %v2785_v45 = vpack.c.bf16 %v134_v28, %v130_v23  ;;  %v2787_v46 = vpack.c.bf16 %v141_v30, %v137_v29  ;;  %v136_v47 = vld [vmem:[#allocation2 + $0x280] sm:$0xff]  ;;  %v138_v55 = vld [vmem:[#allocation2 + $0x290] sm:$0xff] }
  0x2f   :  { %1898 = vmatpush1.bf16.msra.mxu0 %v2742_v33  ;;  %v140_v48 = vld [vmem:[#allocation2 + $0x2a0] sm:$0xff]  ;;  %v2790_v56 = vpack.c.bf16 %v143_v37, %v139_v32  ;;  %v142_v58 = vld [vmem:[#allocation2 + $0x2b0] sm:$0xff]  ;;  %v145_v60 = vld [vmem:[#allocation2 + $0x2c8] sm:$0xff] }
  0x30   :  { %2026 = vmatpush1.bf16.msra.mxu1 %v2746_v34  ;;  %1900 = vmatprep.subr.bf16.mxu0 %v2748_v36  ;;  %3908 = vst [vmem:[#allocation6_spill] sm:$0xff] %v2785_v45  ;;  %3909 = vst [vmem:[#allocation7_spill] sm:$0xff] %v2787_v46  ;;  %v149_v61 = vld [vmem:[#allocation2 + $0x2e8] sm:$0xff]  ;;  %v147_v62 = vld [vmem:[#allocation2 + $0x2d8] sm:$0xff]  ;;  %v2796_v9 = vpack.c.bf16 %v140_v48, %v136_v47  ;;  %v2800_v20 = vpack.c.bf16 %v142_v58, %v138_v55 }
  0x31   :  { %2028 = vmatprep.subr.bf16.mxu1 %v2751_v42  ;;  %3910 = vst [vmem:[#allocation8_spill] sm:$0xff] %v2790_v56  ;;  %v151_v2 = vld [vmem:[#allocation2 + $0x2f8] sm:$0xff]  ;;  %v144_v10 = vld [vmem:[#allocation2 + $0x2c0] sm:$0xff]  ;;  %v2802_v22 = vpack.c.bf16 %v149_v61, %v145_v60  ;;  %v146_v28 = vld [vmem:[#allocation2 + $0x2d0] sm:$0xff] }
  0x32   :  { %3911 = vst [vmem:[#allocation9_spill] sm:$0xff] %v2796_v9  ;;  %3912 = vst [vmem:[#allocation10_spill] sm:$0xff] %v2800_v20  ;;  %v148_v23 = vld [vmem:[#allocation2 + $0x2e0] sm:$0xff]  ;;  %v150_v29 = vld [vmem:[#allocation2 + $0x2f0] sm:$0xff]  ;;  %v2805_v30 = vpack.c.bf16 %v151_v2, %v147_v62 }
  0x33   :  { %1902 = vmatpush1.bf16.msra.mxu0 %v2754_v49  ;;  %3913 = vst [vmem:[#allocation11_spill] sm:$0xff] %v2802_v22  ;;  %v153_v32 = vld [vmem:[#allocation2 + $0x308] sm:$0xff]  ;;  %v2810_v41 = vld [vmem:[%s3763_s0] sm:$0xff]  ;;  %v155_v47 = vld [vmem:[#allocation2 + $0x318] sm:$0xff]  ;;  %v2817_v58 = vpack.c.bf16 %v148_v23, %v144_v10  ;;  %v2821_v60 = vpack.c.bf16 %v150_v29, %v146_v28 }
  0x34   :  { %2030 = vmatpush1.bf16.msra.mxu1 %v2758_v50  ;;  %1904 = vmatprep.subr.bf16.mxu0 %v2760_v54  ;;  %3914 = vst [vmem:[#allocation12_spill] sm:$0xff] %v2805_v30  ;;  %v157_v37 = vld [vmem:[#allocation2 + $0x328] sm:$0xff]  ;;  %v159_v48 = vld [vmem:[#allocation2 + $0x338] sm:$0xff]  ;;  %v2814_v55 = vrot.slane %v2810_v41, %v2793_v4  ;;  %v152_v62 = vld [vmem:[#allocation2 + $0x300] sm:$0xff] }
  0x35   :  { %2032 = vmatprep.subr.bf16.mxu1 %v2763_v59  ;;  %3915 = vst [vmem:[#allocation13_spill] sm:$0xff] %v2817_v58  ;;  %3916 = vst [vmem:[#allocation14_spill] sm:$0xff] %v2821_v60  ;;  %v2823_v61 = vpack.c.bf16 %v157_v37, %v153_v32  ;;  %v156_v2 = vld [vmem:[#allocation2 + $0x320] sm:$0xff]  ;;  %v154_v5 = vld [vmem:[#allocation2 + $0x310] sm:$0xff] }
  0x36   :  { %v158_v10 = vld [vmem:[#allocation2 + $0x330] sm:$0xff]  ;;  %v161_v23 = vld [vmem:[#allocation2 + $0x348] sm:$0xff]  ;;  %v2831_v28 = vpack.c.bf16 %v156_v2, %v152_v62  ;;  %v160_v37 = vld [vmem:[#allocation2 + $0x340] sm:$0xff] }
  0x37   :  { %1906 = vmatpush1.bf16.msra.mxu0 %v2766_v11  ;;  %3917 = vst [vmem:[#allocation15_spill] sm:$0xff] %v2823_v61  ;;  %v2835_v29 = vpack.c.bf16 %v158_v10, %v154_v5  ;;  %v171_v62 = vld [vmem:[#allocation2 + $0x398] sm:$0xff]  ;;  %v168_v10 = vld [vmem:[#allocation2 + $0x380] sm:$0xff] }
  0x38   :  { %2034 = vmatpush1.bf16.msra.mxu1 %v2770_v13  ;;  %1908 = vmatprep.subr.bf16.mxu0 %v2772_v14  ;;  %3919 = vst [vmem:[#allocation17_spill] sm:$0xff] %v2831_v28  ;;  %v175_v2 = vld [vmem:[#allocation2 + $0x3b8] sm:$0xff] }
  0x39   :  { %2036 = vmatprep.subr.bf16.mxu1 %v2775_v25  ;;  %3920 = vst [vmem:[#allocation18_spill] sm:$0xff] %v2835_v29 }
  0x3b   :  { %1910 = vmatpush1.bf16.msra.mxu0 %v2781_v43 }
  0x3c   :  { %2038 = vmatpush1.bf16.msra.mxu1 %v2785_v45  ;;  %1912 = vmatprep.subr.bf16.mxu0 %v2787_v46  ;;  %v2828_v46 = vpack.c.bf16 %v159_v48, %v155_v47  ;;  %v167_v45 = vld [vmem:[#allocation2 + $0x378] sm:$0xff]  ;;  %v164_v47 = vld [vmem:[#allocation2 + $0x360] sm:$0xff]  ;;  %v162_v48 = vld [vmem:[#allocation2 + $0x350] sm:$0xff] }
  0x3d   :  { %2040 = vmatprep.subr.bf16.mxu1 %v2790_v56  ;;  %v350_v56 = vcombine.high %v2814_v55, %v2814_v55 }
  0x3e   :  { %3918 = vst [vmem:[#allocation16_spill] sm:$0xff] %v2828_v46 }
  0x3f   :  { %1914 = vmatpush1.bf16.msra.mxu0 %v2796_v9  ;;  %v165_v9 = vld [vmem:[#allocation2 + $0x368] sm:$0xff]  ;;  %420 = vmatprep.mubr.f32.mxu0 %v350_v56 }
  0x40   :  { %2042 = vmatpush1.bf16.msra.mxu1 %v2800_v20  ;;  %1916 = vmatprep.subr.bf16.mxu0 %v2802_v22  ;;  %v163_v20 = vld [vmem:[#allocation2 + $0x358] sm:$0xff]  ;;  %v2837_v32 = vpack.c.bf16 %v165_v9, %v161_v23  ;;  %v169_v22 = vld [vmem:[#allocation2 + $0x388] sm:$0xff]  ;;  %v2852_v23 = vpack.c.bf16 %v175_v2, %v171_v62  ;;  %v178_v62 = vld [vmem:[#allocation2 + $0x3d0] sm:$0xff] }
  0x41   :  { %2044 = vmatprep.subr.bf16.mxu1 %v2805_v30  ;;  %562 = vmatprep.mubr.f32.mxu1 %v350_v56  ;;  %v2840_v30 = vpack.c.bf16 %v167_v45, %v163_v20  ;;  %v166_v56 = vld [vmem:[#allocation2 + $0x370] sm:$0xff]  ;;  %v172_v45 = vld [vmem:[#allocation2 + $0x3a0] sm:$0xff] }
  0x42   :  { %3921 = vst [vmem:[#allocation19_spill] sm:$0xff] %v2837_v32  ;;  %v2847_v5 = vpack.c.bf16 %v166_v56, %v162_v48  ;;  %v170_v20 = vld [vmem:[#allocation2 + $0x390] sm:$0xff]  ;;  %3926 = vst [vmem:[#allocation24_spill] sm:$0xff] %v2852_v23  ;;  %v176_v48 = vld [vmem:[#allocation2 + $0x3c0] sm:$0xff] }
  0x43   :  { %1918 = vmatpush1.bf16.msra.mxu0 %v2817_v58  ;;  %3922 = vst [vmem:[#allocation20_spill] sm:$0xff] %v2840_v30  ;;  %v173_v58 = vld [vmem:[#allocation2 + $0x3a8] sm:$0xff]  ;;  %v180_v56 = vld [vmem:[#allocation2 + $0x3e0] sm:$0xff] }
  0x44   :  { %2046 = vmatpush1.bf16.msra.mxu1 %v2821_v60  ;;  %1920 = vmatprep.subr.bf16.mxu0 %v2823_v61  ;;  %v2843_v60 = vpack.c.bf16 %v164_v47, %v160_v37  ;;  %3924 = vst [vmem:[#allocation22_spill] sm:$0xff] %v2847_v5  ;;  %v2849_v9 = vpack.c.bf16 %v173_v58, %v169_v22  ;;  %v177_v61 = vld [vmem:[#allocation2 + $0x3c8] sm:$0xff]  ;;  %v179_v37 = vld [vmem:[#allocation2 + $0x3d8] sm:$0xff] }
  0x45   :  { %2048 = vmatprep.subr.bf16.mxu1 %v2828_v46  ;;  %v174_v46 = vld [vmem:[#allocation2 + $0x3b0] sm:$0xff]  ;;  %v183_v47 = vld [vmem:[#allocation2 + $0x3f8] sm:$0xff] }
  0x46   :  { %3923 = vst [vmem:[#allocation21_spill] sm:$0xff] %v2843_v60  ;;  %3925 = vst [vmem:[#allocation23_spill] sm:$0xff] %v2849_v9  ;;  %v2859_v22 = vpack.c.bf16 %v174_v46, %v170_v20  ;;  %v2864_v2 = vpack.c.bf16 %v183_v47, %v179_v37  ;;  %v2869_v46 = vpack.c.bf16 %v180_v56, %v176_v48  ;;  %v184_v20 = vld [vmem:[#allocation2 + $0x400] sm:$0xff]  ;;  %v186_v47 = vld [vmem:[#allocation2 + $0x410] sm:$0xff] }
  0x47   :  { %1922 = vmatpush1.bf16.msra.mxu0 %v2831_v28  ;;  %v181_v28 = vld [vmem:[#allocation2 + $0x3e8] sm:$0xff]  ;;  %v188_v37 = vld [vmem:[#allocation2 + $0x420] sm:$0xff]  ;;  %v195_v56 = vld [vmem:[#allocation2 + $0x458] sm:$0xff] }
  0x48   :  { %2050 = vmatpush1.bf16.msra.mxu1 %v2835_v29  ;;  %1924 = vmatprep.subr.bf16.mxu0 %v2837_v32  ;;  %v2855_v29 = vpack.c.bf16 %v172_v45, %v168_v10  ;;  %3928 = vst [vmem:[#allocation26_spill] sm:$0xff] %v2859_v22  ;;  %v2861_v58 = vpack.c.bf16 %v181_v28, %v177_v61  ;;  %3930 = vst [vmem:[#allocation28_spill] sm:$0xff] %v2864_v2  ;;  %v185_v45 = vld [vmem:[#allocation2 + $0x408] sm:$0xff]  ;;  %v191_v32 = vld [vmem:[#allocation2 + $0x438] sm:$0xff] }
  0x49   :  { %2052 = vmatprep.subr.bf16.mxu1 %v2840_v30  ;;  %v182_v30 = vld [vmem:[#allocation2 + $0x3f0] sm:$0xff]  ;;  %v335_v10 = vcombine.high %v2810_v41, %v2810_v41  ;;  %3931 = vst [vmem:[#allocation29_spill] sm:$0xff] %v2869_v46 }
  0x4a   :  { %3927 = vst [vmem:[#allocation25_spill] sm:$0xff] %v2855_v29  ;;  %3929 = vst [vmem:[#allocation27_spill] sm:$0xff] %v2861_v58  ;;  %v2873_v61 = vpack.c.bf16 %v182_v30, %v178_v62  ;;  %v2884_v30 = vpack.c.bf16 %v188_v37, %v184_v20  ;;  %v196_v62 = vld [vmem:[#allocation2 + $0x460] sm:$0xff]  ;;  %v203_v37 = vld [vmem:[#allocation2 + $0x498] sm:$0xff] }
  0x4b   :  { %1926 = vmatpush1.bf16.msra.mxu0 %v2843_v60  ;;  %v189_v60 = vld [vmem:[#allocation2 + $0x428] sm:$0xff]  ;;  %v2881_v48 = vrot.slane %v335_v10, %v2793_v4 }
  0x4c   :  { %2054 = vmatpush1.bf16.msra.mxu1 %v2847_v5  ;;  %1928 = vmatprep.subr.bf16.mxu0 %v2849_v9  ;;  %v187_v5 = vld [vmem:[#allocation2 + $0x418] sm:$0xff]  ;;  %3932 = vst [vmem:[#allocation30_spill] sm:$0xff] %v2873_v61  ;;  %v2875_v28 = vpack.c.bf16 %v189_v60, %v185_v45  ;;  %v193_v9 = vld [vmem:[#allocation2 + $0x448] sm:$0xff]  ;;  %3935 = vst [vmem:[#allocation33_spill] sm:$0xff] %v2884_v30 }
  0x4d   :  { %2056 = vmatprep.subr.bf16.mxu1 %v2852_v23  ;;  %v2878_v41 = vpack.c.bf16 %v191_v32, %v187_v5  ;;  %v190_v23 = vld [vmem:[#allocation2 + $0x430] sm:$0xff]  ;;  %v192_v5 = vld [vmem:[#allocation2 + $0x440] sm:$0xff]  ;;  %v351_v20 = vcombine.high %v2881_v48, %v2881_v48 }
  0x4e   :  { %3933 = vst [vmem:[#allocation31_spill] sm:$0xff] %v2875_v28  ;;  %v2888_v60 = vpack.c.bf16 %v190_v23, %v186_v47  ;;  %v194_v45 = vld [vmem:[#allocation2 + $0x450] sm:$0xff]  ;;  %v207_v23 = vld [vmem:[#allocation2 + $0x4b8] sm:$0xff]  ;;  %v200_v47 = vld [vmem:[#allocation2 + $0x480] sm:$0xff] }
  0x4f   :  { %1930 = vmatpush1.bf16.msra.mxu0 %v2855_v29  ;;  %3934 = vst [vmem:[#allocation32_spill] sm:$0xff] %v2878_v41  ;;  %v197_v29 = vld [vmem:[#allocation2 + $0x468] sm:$0xff] }
  0x50   :  { %2058 = vmatpush1.bf16.msra.mxu1 %v2859_v22  ;;  %1932 = vmatprep.subr.bf16.mxu0 %v2861_v58  ;;  %v199_v22 = vld [vmem:[#allocation2 + $0x478] sm:$0xff]  ;;  %3936 = vst [vmem:[#allocation34_spill] sm:$0xff] %v2888_v60  ;;  %v2890_v32 = vpack.c.bf16 %v197_v29, %v193_v9  ;;  %v201_v58 = vld [vmem:[#allocation2 + $0x488] sm:$0xff]  ;;  %v2900_v29 = vpack.c.bf16 %v196_v62, %v192_v5 }
  0x51   :  { %2060 = vmatprep.subr.bf16.mxu1 %v2864_v2  ;;  %v2893_v10 = vpack.c.bf16 %v199_v22, %v195_v56  ;;  %v198_v2 = vld [vmem:[#allocation2 + $0x470] sm:$0xff]  ;;  %v204_v56 = vld [vmem:[#allocation2 + $0x4a0] sm:$0xff]  ;;  %v211_v5 = vld [vmem:[#allocation2 + $0x4d8] sm:$0xff] }
  0x52   :  { %3937 = vst [vmem:[#allocation35_spill] sm:$0xff] %v2890_v32  ;;  %3939 = vst [vmem:[#allocation37_spill] sm:$0xff] %v2900_v29  ;;  %v2904_v9 = vpack.c.bf16 %v198_v2, %v194_v45  ;;  %v215_v62 = vld [vmem:[#allocation2 + $0x4f8] sm:$0xff]  ;;  %v2912_v2 = vpack.c.bf16 %v204_v56, %v200_v47  ;;  %v208_v45 = vld [vmem:[#allocation2 + $0x4c0] sm:$0xff] }
  0x53   :  { %1934 = vmatpush1.bf16.msra.mxu0 %v2869_v46  ;;  %3938 = vst [vmem:[#allocation36_spill] sm:$0xff] %v2893_v10  ;;  %v205_v46 = vld [vmem:[#allocation2 + $0x4a8] sm:$0xff]  ;;  %v219_v47 = vld [vmem:[#allocation2 + $0x518] sm:$0xff] }
  0x54   :  { %2062 = vmatpush1.bf16.msra.mxu1 %v2873_v61  ;;  %1936 = vmatprep.subr.bf16.mxu0 %v2875_v28  ;;  %3940 = vst [vmem:[#allocation38_spill] sm:$0xff] %v2904_v9  ;;  %v2906_v22 = vpack.c.bf16 %v205_v46, %v201_v58  ;;  %v2909_v28 = vpack.c.bf16 %v207_v23, %v203_v37  ;;  %v209_v61 = vld [vmem:[#allocation2 + $0x4c8] sm:$0xff]  ;;  %3943 = vst [vmem:[#allocation41_spill] sm:$0xff] %v2912_v2  ;;  %v212_v37 = vld [vmem:[#allocation2 + $0x4e0] sm:$0xff] }
  0x55   :  { %2064 = vmatprep.subr.bf16.mxu1 %v2878_v41  ;;  %v202_v41 = vld [vmem:[#allocation2 + $0x490] sm:$0xff]  ;;  %v223_v56 = vld [vmem:[#allocation2 + $0x538] sm:$0xff] }
  0x56   :  { %421 = vmatmul.mubr.f32.vlgmr.msra.gmra.mrb[0].mxu0 %v2814_v55  ;;  %3941 = vst [vmem:[#allocation39_spill] sm:$0xff] %v2906_v22  ;;  %3942 = vst [vmem:[#allocation40_spill] sm:$0xff] %v2909_v28  ;;  %v210_v23 = vld [vmem:[#allocation2 + $0x4d0] sm:$0xff] }
  0x57   :  { %1938 = vmatpush1.bf16.msra.mxu0 %v2884_v30  ;;  %563 = vmatmul.mubr.f32.vlgmr.msra.gmra.mrb[0].mxu1 %v2814_v55  ;;  %v206_v30 = vld [vmem:[#allocation2 + $0x4b0] sm:$0xff]  ;;  %v213_v55 = vld [vmem:[#allocation2 + $0x4e8] sm:$0xff] }
  0x58   :  { %2066 = vmatpush1.bf16.msra.mxu1 %v2888_v60  ;;  %1940 = vmatprep.subr.bf16.mxu0 %v2890_v32  ;;  %v2916_v58 = vpack.c.bf16 %v206_v30, %v202_v41  ;;  %v2918_v46 = vpack.c.bf16 %v213_v55, %v209_v61  ;;  %v217_v32 = vld [vmem:[#allocation2 + $0x508] sm:$0xff]  ;;  %v216_v30 = vld [vmem:[#allocation2 + $0x500] sm:$0xff] }
  0x59   :  { %2068 = vmatprep.subr.bf16.mxu1 %v2893_v10  ;;  %491 = vmatprep.mubr.f32.mxu0 %v351_v20  ;;  %v2921_v10 = vpack.c.bf16 %v215_v62, %v211_v5  ;;  %v220_v55 = vld [vmem:[#allocation2 + $0x520] sm:$0xff]  ;;  %v218_v5 = vld [vmem:[#allocation2 + $0x510] sm:$0xff]  ;;  %v2933_v62 = vpack.c.bf16 %v223_v56, %v219_v47  ;;  %v249_v60 = vld [vmem:[#allocation2 + $0x608] sm:$0xff] }
  0x5a   :  { %633 = vmatprep.mubr.f32.mxu1 %v351_v20  ;;  %3944 = vst [vmem:[#allocation42_spill] sm:$0xff] %v2916_v58  ;;  %3945 = vst [vmem:[#allocation43_spill] sm:$0xff] %v2918_v46  ;;  %v214_v20 = vld [vmem:[#allocation2 + $0x4f0] sm:$0xff] }
  0x5b   :  { %1942 = vmatpush1.bf16.msra.mxu0 %v2900_v29  ;;  %3946 = vst [vmem:[#allocation44_spill] sm:$0xff] %v2921_v10  ;;  %v221_v29 = vld [vmem:[#allocation2 + $0x528] sm:$0xff]  ;;  %v2928_v61 = vpack.c.bf16 %v214_v20, %v210_v23  ;;  %3950 = vst [vmem:[#allocation48_spill] sm:$0xff] %v2933_v62  ;;  %v224_v23 = vld [vmem:[#allocation2 + $0x540] sm:$0xff] }
  0x5c   :  { %2070 = vmatpush1.bf16.msra.mxu1 %v2904_v9  ;;  %1944 = vmatprep.subr.bf16.mxu0 %v2906_v22  ;;  %v2924_v9 = vpack.c.bf16 %v212_v37, %v208_v45  ;;  %v2930_v41 = vpack.c.bf16 %v221_v29, %v217_v32  ;;  %v225_v22 = vld [vmem:[#allocation2 + $0x548] sm:$0xff]  ;;  %v227_v45 = vld [vmem:[#allocation2 + $0x558] sm:$0xff]  ;;  %v228_v20 = vld [vmem:[#allocation2 + $0x560] sm:$0xff] }
  0x5d   :  { %2072 = vmatprep.subr.bf16.mxu1 %v2909_v28  ;;  %3948 = vst [vmem:[#allocation46_spill] sm:$0xff] %v2928_v61  ;;  %v222_v28 = vld [vmem:[#allocation2 + $0x530] sm:$0xff]  ;;  %v231_v37 = vld [vmem:[#allocation2 + $0x578] sm:$0xff] }
  0x5e   :  { %3947 = vst [vmem:[#allocation45_spill] sm:$0xff] %v2924_v9  ;;  %3949 = vst [vmem:[#allocation47_spill] sm:$0xff] %v2930_v41  ;;  %v2940_v32 = vpack.c.bf16 %v222_v28, %v218_v5  ;;  %v226_v47 = vld [vmem:[#allocation2 + $0x550] sm:$0xff]  ;;  %v2945_v56 = vpack.c.bf16 %v231_v37, %v227_v45  ;;  %v232_v28 = vld [vmem:[#allocation2 + $0x580] sm:$0xff] }
  0x5f   :  { %1946 = vmatpush1.bf16.msra.mxu0 %v2912_v2  ;;  %v229_v2 = vld [vmem:[#allocation2 + $0x568] sm:$0xff]  ;;  %v236_v5 = vld [vmem:[#allocation2 + $0x5a0] sm:$0xff]  ;;  %v234_v45 = vld [vmem:[#allocation2 + $0x590] sm:$0xff] }
  0x60   :  { %2074 = vmatpush1.bf16.msra.mxu1 %v2916_v58  ;;  %1948 = vmatprep.subr.bf16.mxu0 %v2918_v46  ;;  %v2936_v58 = vpack.c.bf16 %v220_v55, %v216_v30  ;;  %3952 = vst [vmem:[#allocation50_spill] sm:$0xff] %v2940_v32  ;;  %v2942_v29 = vpack.c.bf16 %v229_v2, %v225_v22  ;;  %3954 = vst [vmem:[#allocation52_spill] sm:$0xff] %v2945_v56  ;;  %v233_v46 = vld [vmem:[#allocation2 + $0x588] sm:$0xff]  ;;  %v235_v30 = vld [vmem:[#allocation2 + $0x598] sm:$0xff] }
  0x61   :  { %2076 = vmatprep.subr.bf16.mxu1 %v2921_v10  ;;  %v230_v10 = vld [vmem:[#allocation2 + $0x570] sm:$0xff]  ;;  %v239_v55 = vld [vmem:[#allocation2 + $0x5b8] sm:$0xff]  ;;  %v55_v37 = vld [vmem:[%s3765_s2] sm:$0x3] }
  0x62   :  { %3951 = vst [vmem:[#allocation49_spill] sm:$0xff] %v2936_v58  ;;  %3953 = vst [vmem:[#allocation51_spill] sm:$0xff] %v2942_v29  ;;  %v2952_v22 = vpack.c.bf16 %v230_v10, %v226_v47  ;;  %645 = vperm.xlu0 %2565, %v55_v37   ;;  %v1056_v10 = vld [vmem:[%s3766_s3] sm:$0x3]  ;;  %v242_v37 = vld [vmem:[#allocation2 + $0x5d0] sm:$0xff] }
  0x63   :  { %1950 = vmatpush1.bf16.msra.mxu0 %v2924_v9  ;;  %v237_v9 = vld [vmem:[#allocation2 + $0x5a8] sm:$0xff] }
  0x64   :  { %2078 = vmatpush1.bf16.msra.mxu1 %v2928_v61  ;;  %1952 = vmatprep.subr.bf16.mxu0 %v2930_v41  ;;  %v2948_v61 = vpack.c.bf16 %v228_v20, %v224_v23  ;;  %v2954_v2 = vpack.c.bf16 %v237_v9, %v233_v46  ;;  %v238_v23 = vld [vmem:[#allocation2 + $0x5b0] sm:$0xff]  ;;  %v241_v20 = vld [vmem:[#allocation2 + $0x5c8] sm:$0xff]  ;;  %v2966_v9 = vpack.c.bf16 %v236_v5, %v232_v28  ;;  %v251_v28 = vld [vmem:[#allocation2 + $0x618] sm:$0xff] }
  0x65   :  { %2080 = vmatprep.subr.bf16.mxu1 %v2933_v62  ;;  %v245_v62 = vld [vmem:[#allocation2 + $0x5e8] sm:$0xff]  ;;  %v2970_v46 = vpack.c.bf16 %v238_v23, %v234_v45  ;;  %v246_v41 = vld [vmem:[#allocation2 + $0x5f0] sm:$0xff]  ;;  %v255_v5 = vld [vmem:[#allocation2 + $0x638] sm:$0xff] }
  0x66   :  { %3955 = vst [vmem:[#allocation53_spill] sm:$0xff] %v2948_v61  ;;  %3956 = vst [vmem:[#allocation54_spill] sm:$0xff] %v2954_v2  ;;  %v2972_v47 = vpack.c.bf16 %v245_v62, %v241_v20  ;;  %1368 = vperm.xlu0 %2565, %v1056_v10   ;;  %v2982_v62 = vpack.c.bf16 %v246_v41, %v242_v37  ;;  %v250_v23 = vld [vmem:[#allocation2 + $0x610] sm:$0xff]  ;;  %v2987_v20 = vpack.c.bf16 %v255_v5, %v251_v28  ;;  %v256_v41 = vld [vmem:[#allocation2 + $0x640] sm:$0xff] }
  0x67   :  { %1954 = vmatpush1.bf16.msra.mxu0 %v2936_v58  ;;  %v2960_v58 = vpack.c.bf16 %v239_v55, %v235_v30  ;;  %3958 = vst [vmem:[#allocation56_spill] sm:$0xff] %v2966_v9  ;;  %3959 = vst [vmem:[#allocation57_spill] sm:$0xff] %v2970_v46  ;;  %v240_v30 = vld [vmem:[#allocation2 + $0x5c0] sm:$0xff]  ;;  %v254_v10 = vld [vmem:[#allocation2 + $0x630] sm:$0xff] }
  0x68   :  { %2082 = vmatpush1.bf16.msra.mxu1 %v2940_v32  ;;  %1956 = vmatprep.subr.bf16.mxu0 %v2942_v29  ;;  %v243_v32 = vld [vmem:[#allocation2 + $0x5d8] sm:$0xff]  ;;  %3960 = vst [vmem:[#allocation58_spill] sm:$0xff] %v2972_v47  ;;  %v244_v55 = vld [vmem:[#allocation2 + $0x5e0] sm:$0xff]  ;;  %3963 = vst [vmem:[#allocation61_spill] sm:$0xff] %v2982_v62 }
  0x69   :  { %2084 = vmatprep.subr.bf16.mxu1 %v2945_v56  ;;  %3957 = vst [vmem:[#allocation55_spill] sm:$0xff] %v2960_v58  ;;  %v247_v29 = vld [vmem:[#allocation2 + $0x5f8] sm:$0xff]  ;;  %3965 = vst [vmem:[#allocation63_spill] sm:$0xff] %v2987_v20  ;;  %v260_v37 = vld [vmem:[#allocation2 + $0x660] sm:$0xff] }
  0x6a   :  { %v2975_v56 = vpack.c.bf16 %v247_v29, %v243_v32  ;;  %v248_v32 = vld [vmem:[#allocation2 + $0x600] sm:$0xff]  ;;  %v258_v28 = vld [vmem:[#allocation2 + $0x650] sm:$0xff] }
  0x6b   :  { %1958 = vmatpush1.bf16.msra.mxu0 %v2948_v61  ;;  %v253_v61 = vld [vmem:[#allocation2 + $0x628] sm:$0xff]  ;;  %v252_v29 = vld [vmem:[#allocation2 + $0x620] sm:$0xff] }
  0x6c   :  { %2086 = vmatpush1.bf16.msra.mxu1 %v2952_v22  ;;  %1960 = vmatprep.subr.bf16.mxu0 %v2954_v2  ;;  %3961 = vst [vmem:[#allocation59_spill] sm:$0xff] %v2975_v56  ;;  %v2978_v2 = vpack.c.bf16 %v244_v55, %v240_v30  ;;  %v2984_v45 = vpack.c.bf16 %v253_v61, %v249_v60  ;;  %v259_v30 = vld [vmem:[#allocation2 + $0x658] sm:$0xff] }
  0x6d   :  { %2088 = vmatprep.subr.bf16.mxu1 %v2960_v58  ;;  %v257_v58 = vld [vmem:[#allocation2 + $0x648] sm:$0xff]  ;;  %v263_v55 = vld [vmem:[#allocation2 + $0x678] sm:$0xff]  ;;  %v2994_v60 = vpack.c.bf16 %v254_v10, %v250_v23  ;;  %v264_v23 = vld [vmem:[#allocation2 + $0x680] sm:$0xff] }
  0x6e   :  { %3962 = vst [vmem:[#allocation60_spill] sm:$0xff] %v2978_v2  ;;  %3964 = vst [vmem:[#allocation62_spill] sm:$0xff] %v2984_v45  ;;  %v2999_v5 = vpack.c.bf16 %v263_v55, %v259_v30  ;;  %v268_v10 = vld [vmem:[#allocation2 + $0x6a0] sm:$0xff]  ;;  %v266_v30 = vld [vmem:[#allocation2 + $0x690] sm:$0xff] }
  0x6f   :  { %1962 = vmatpush1.bf16.msra.mxu0 %v2966_v9  ;;  %v261_v9 = vld [vmem:[#allocation2 + $0x668] sm:$0xff]  ;;  %3967 = vst [vmem:[#allocation65_spill] sm:$0xff] %v2994_v60 }
  0x70   :  { %2090 = vmatpush1.bf16.msra.mxu1 %v2970_v46  ;;  %1964 = vmatprep.subr.bf16.mxu0 %v2972_v47  ;;  %v2990_v46 = vpack.c.bf16 %v252_v29, %v248_v32  ;;  %v2996_v61 = vpack.c.bf16 %v261_v9, %v257_v58  ;;  %3969 = vst [vmem:[#allocation67_spill] sm:$0xff] %v2999_v5  ;;  %v265_v47 = vld [vmem:[#allocation2 + $0x688] sm:$0xff]  ;;  %v267_v32 = vld [vmem:[#allocation2 + $0x698] sm:$0xff] }
  0x71   :  { %2092 = vmatprep.subr.bf16.mxu1 %v2975_v56  ;;  %v262_v56 = vld [vmem:[#allocation2 + $0x670] sm:$0xff]  ;;  %v271_v29 = vld [vmem:[#allocation2 + $0x6b8] sm:$0xff] }
  0x72   :  { %3966 = vst [vmem:[#allocation64_spill] sm:$0xff] %v2990_v46  ;;  %3968 = vst [vmem:[#allocation66_spill] sm:$0xff] %v2996_v61  ;;  %v3006_v58 = vpack.c.bf16 %v262_v56, %v258_v28  ;;  %v3011_v55 = vpack.c.bf16 %v271_v29, %v267_v32  ;;  %v276_v28 = vld [vmem:[#allocation2 + $0x6e0] sm:$0xff]  ;;  %v274_v32 = vld [vmem:[#allocation2 + $0x6d0] sm:$0xff] }
  0x73   :  { %1966 = vmatpush1.bf16.msra.mxu0 %v2978_v2  ;;  %v269_v2 = vld [vmem:[#allocation2 + $0x6a8] sm:$0xff] }
  0x74   :  { %2094 = vmatpush1.bf16.msra.mxu1 %v2982_v62  ;;  %1968 = vmatprep.subr.bf16.mxu0 %v2984_v45  ;;  %v3002_v62 = vpack.c.bf16 %v260_v37, %v256_v41  ;;  %3971 = vst [vmem:[#allocation69_spill] sm:$0xff] %v3006_v58  ;;  %v3008_v9 = vpack.c.bf16 %v269_v2, %v265_v47  ;;  %3973 = vst [vmem:[#allocation71_spill] sm:$0xff] %v3011_v55  ;;  %v273_v45 = vld [vmem:[#allocation2 + $0x6c8] sm:$0xff]  ;;  %v275_v41 = vld [vmem:[#allocation2 + $0x6d8] sm:$0xff] }
  0x75   :  { %2096 = vmatprep.subr.bf16.mxu1 %v2987_v20  ;;  %v270_v20 = vld [vmem:[#allocation2 + $0x6b0] sm:$0xff]  ;;  %v279_v37 = vld [vmem:[#allocation2 + $0x6f8] sm:$0xff]  ;;  %v272_v47 = vld [vmem:[#allocation2 + $0x6c0] sm:$0xff] }
  0x76   :  { %3970 = vst [vmem:[#allocation68_spill] sm:$0xff] %v3002_v62  ;;  %3972 = vst [vmem:[#allocation70_spill] sm:$0xff] %v3008_v9  ;;  %v3018_v56 = vpack.c.bf16 %v270_v20, %v266_v30  ;;  %v3023_v29 = vpack.c.bf16 %v279_v37, %v275_v41  ;;  %v280_v20 = vld [vmem:[#allocation2 + $0x700] sm:$0xff]  ;;  %v282_v41 = vld [vmem:[#allocation2 + $0x710] sm:$0xff] }
  0x77   :  { %1970 = vmatpush1.bf16.msra.mxu0 %v2990_v46  ;;  %v277_v46 = vld [vmem:[#allocation2 + $0x6e8] sm:$0xff]  ;;  %v284_v30 = vld [vmem:[#allocation2 + $0x720] sm:$0xff] }
  0x78   :  { %2098 = vmatpush1.bf16.msra.mxu1 %v2994_v60  ;;  %1972 = vmatprep.subr.bf16.mxu0 %v2996_v61  ;;  %v3014_v60 = vpack.c.bf16 %v268_v10, %v264_v23  ;;  %3975 = vst [vmem:[#allocation73_spill] sm:$0xff] %v3018_v56  ;;  %v3020_v2 = vpack.c.bf16 %v277_v46, %v273_v45  ;;  %3977 = vst [vmem:[#allocation75_spill] sm:$0xff] %v3023_v29  ;;  %v281_v61 = vld [vmem:[#allocation2 + $0x708] sm:$0xff]  ;;  %v283_v23 = vld [vmem:[#allocation2 + $0x718] sm:$0xff] }
  0x79   :  { %2100 = vmatprep.subr.bf16.mxu1 %v2999_v5  ;;  %v278_v5 = vld [vmem:[#allocation2 + $0x6f0] sm:$0xff]  ;;  %v287_v10 = vld [vmem:[#allocation2 + $0x738] sm:$0xff] }
  0x7a   :  { %3974 = vst [vmem:[#allocation72_spill] sm:$0xff] %v3014_v60  ;;  %3976 = vst [vmem:[#allocation74_spill] sm:$0xff] %v3020_v2  ;;  %v3030_v46 = vpack.c.bf16 %v278_v5, %v274_v32  ;;  %v3035_v37 = vpack.c.bf16 %v287_v10, %v283_v23  ;;  %v288_v5 = vld [vmem:[#allocation2 + $0x740] sm:$0xff]  ;;  %v290_v23 = vld [vmem:[#allocation2 + $0x750] sm:$0xff] }
  0x7b   :  { %1974 = vmatpush1.bf16.msra.mxu0 %v3002_v62  ;;  %v285_v62 = vld [vmem:[#allocation2 + $0x728] sm:$0xff]  ;;  %v292_v32 = vld [vmem:[#allocation2 + $0x760] sm:$0xff] }
  0x7c   :  { %2102 = vmatpush1.bf16.msra.mxu1 %v3006_v58  ;;  %1976 = vmatprep.subr.bf16.mxu0 %v3008_v9  ;;  %v3026_v58 = vpack.c.bf16 %v276_v28, %v272_v47  ;;  %3979 = vst [vmem:[#allocation77_spill] sm:$0xff] %v3030_v46  ;;  %v3032_v45 = vpack.c.bf16 %v285_v62, %v281_v61  ;;  %3981 = vst [vmem:[#allocation79_spill] sm:$0xff] %v3035_v37  ;;  %v289_v9 = vld [vmem:[#allocation2 + $0x748] sm:$0xff]  ;;  %v291_v47 = vld [vmem:[#allocation2 + $0x758] sm:$0xff] }
  0x7d   :  { %2104 = vmatprep.subr.bf16.mxu1 %v3011_v55  ;;  %v286_v55 = vld [vmem:[#allocation2 + $0x730] sm:$0xff]  ;;  %v295_v28 = vld [vmem:[#allocation2 + $0x778] sm:$0xff] }
  0x7e   :  { %3978 = vst [vmem:[#allocation76_spill] sm:$0xff] %v3026_v58  ;;  %3980 = vst [vmem:[#allocation78_spill] sm:$0xff] %v3032_v45  ;;  %v3042_v62 = vpack.c.bf16 %v286_v55, %v282_v41  ;;  %v3047_v10 = vpack.c.bf16 %v295_v28, %v291_v47  ;;  %v296_v55 = vld [vmem:[#allocation2 + $0x780] sm:$0xff]  ;;  %v298_v47 = vld [vmem:[#allocation2 + $0x790] sm:$0xff] }
  0x7f   :  { %1978 = vmatpush1.bf16.msra.mxu0 %v3014_v60  ;;  %v293_v60 = vld [vmem:[#allocation2 + $0x768] sm:$0xff]  ;;  %v300_v41 = vld [vmem:[#allocation2 + $0x7a0] sm:$0xff] }
  0x80   :  { %2106 = vmatpush1.bf16.msra.mxu1 %v3018_v56  ;;  %1980 = vmatprep.subr.bf16.mxu0 %v3020_v2  ;;  %v3038_v56 = vpack.c.bf16 %v284_v30, %v280_v20  ;;  %3983 = vst [vmem:[#allocation81_spill] sm:$0xff] %v3042_v62  ;;  %v3044_v61 = vpack.c.bf16 %v293_v60, %v289_v9  ;;  %3984 = vst [vmem:[#allocation82_spill] sm:$0xff] %v3047_v10  ;;  %v297_v2 = vld [vmem:[#allocation2 + $0x788] sm:$0xff]  ;;  %v299_v20 = vld [vmem:[#allocation2 + $0x798] sm:$0xff] }
  0x81   :  { %2108 = vmatprep.subr.bf16.mxu1 %v3023_v29  ;;  %v294_v29 = vld [vmem:[#allocation2 + $0x770] sm:$0xff]  ;;  %v303_v30 = vld [vmem:[#allocation2 + $0x7b8] sm:$0xff] }
  0x82   :  { %3982 = vst [vmem:[#allocation80_spill] sm:$0xff] %v3038_v56  ;;  %v3054_v60 = vpack.c.bf16 %v294_v29, %v290_v23  ;;  %v3059_v28 = vpack.c.bf16 %v303_v30, %v299_v20  ;;  %v304_v29 = vld [vmem:[#allocation2 + $0x7c0] sm:$0xff]  ;;  %v306_v20 = vld [vmem:[#allocation2 + $0x7d0] sm:$0xff] }
  0x83   :  { %1982 = vmatpush1.bf16.msra.mxu0 %v3026_v58  ;;  %v301_v58 = vld [vmem:[#allocation2 + $0x7a8] sm:$0xff]  ;;  %v308_v23 = vld [vmem:[#allocation2 + $0x7e0] sm:$0xff] }
  0x84   :  { %2110 = vmatpush1.bf16.msra.mxu1 %v3030_v46  ;;  %1984 = vmatprep.subr.bf16.mxu0 %v3032_v45  ;;  %v3050_v46 = vpack.c.bf16 %v292_v32, %v288_v5  ;;  %v3056_v9 = vpack.c.bf16 %v301_v58, %v297_v2  ;;  %3985 = vst [vmem:[#allocation83_spill] sm:$0xff] %v3059_v28  ;;  %v305_v45 = vld [vmem:[#allocation2 + $0x7c8] sm:$0xff]  ;;  %v307_v5 = vld [vmem:[#allocation2 + $0x7d8] sm:$0xff] }
  0x85   :  { %2112 = vmatprep.subr.bf16.mxu1 %v3035_v37  ;;  %v302_v37 = vld [vmem:[#allocation2 + $0x7b0] sm:$0xff]  ;;  %v311_v32 = vld [vmem:[#allocation2 + $0x7f8] sm:$0xff] }
  0x86   :  { %v3066_v58 = vpack.c.bf16 %v302_v37, %v298_v47  ;;  %v3071_v30 = vpack.c.bf16 %v311_v32, %v307_v5  ;;  %v3086_v37 = vpack.c.bf16 %v308_v23, %v304_v29  ;;  %v655_v32 = vld [vmem:[%s3769_s6] sm:$0xff] }
  0x87   :  { %1986 = vmatpush1.bf16.msra.mxu0 %v3038_v56  ;;  %v309_v56 = vld [vmem:[#allocation2 + $0x7e8] sm:$0xff]  ;;  %v687_v29 = vld [vmem:[%s3769_s6 + $0x100] sm:$0xff] }
  0x88   :  { %2114 = vmatpush1.bf16.msra.mxu1 %v3042_v62  ;;  %1988 = vmatprep.subr.bf16.mxu0 %v3044_v61  ;;  %v3062_v62 = vpack.c.bf16 %v300_v41, %v296_v55  ;;  %3987 = vst [vmem:[#allocation85_spill] sm:$0xff] %v3066_v58  ;;  %v3068_v2 = vpack.c.bf16 %v309_v56, %v305_v45  ;;  %3989 = vst [vmem:[#allocation87_spill] sm:$0xff] %v3071_v30  ;;  %v671_v55 = vld [vmem:[%s3769_s6 + $0x80] sm:$0xff]  ;;  %v672_v41 = vld [vmem:[%s3769_s6 + $0x88] sm:$0xff] }
  0x89   :  { %2116 = vmatprep.subr.bf16.mxu1 %v3047_v10  ;;  %v310_v10 = vld [vmem:[#allocation2 + $0x7f0] sm:$0xff]  ;;  %v703_v56 = vld [vmem:[%s3769_s6 + $0x180] sm:$0xff]  ;;  %v704_v45 = vld [vmem:[%s3769_s6 + $0x188] sm:$0xff]  ;;  %3990 = vst [vmem:[#allocation88_spill] sm:$0xff] %v3086_v37  ;;  %v3092_v5 = vpack.c.bf16 %v672_v41, %v671_v55 }
  0x8a   :  { %3986 = vst [vmem:[#allocation84_spill] sm:$0xff] %v3062_v62  ;;  %3988 = vst [vmem:[#allocation86_spill] sm:$0xff] %v3068_v2  ;;  %v3090_v47 = vpack.c.bf16 %v310_v10, %v306_v20  ;;  %v3104_v23 = vpack.c.bf16 %v704_v45, %v703_v56  ;;  %v688_v10 = vld [vmem:[%s3769_s6 + $0x108] sm:$0xff]  ;;  %v673_v20 = vld [vmem:[%s3769_s6 + $0x90] sm:$0xff] }
  0x8b   :  { %1990 = vmatpush1.bf16.msra.mxu0 %v3050_v46  ;;  %3992 = vst [vmem:[#allocation90_spill] sm:$0xff] %v3092_v5  ;;  %v674_v55 = vld [vmem:[%s3769_s6 + $0x98] sm:$0xff]  ;;  %v705_v41 = vld [vmem:[%s3769_s6 + $0x190] sm:$0xff] }
  0x8c   :  { %2118 = vmatpush1.bf16.msra.mxu1 %v3054_v60  ;;  %1992 = vmatprep.subr.bf16.mxu0 %v3056_v9  ;;  %3991 = vst [vmem:[#allocation89_spill] sm:$0xff] %v3090_v47  ;;  %3993 = vst [vmem:[#allocation91_spill] sm:$0xff] %v3104_v23  ;;  %v706_v56 = vld [vmem:[%s3769_s6 + $0x198] sm:$0xff] }
  0x8d   :  { %2120 = vmatprep.subr.bf16.mxu1 %v3059_v28  ;;  %v656_v28 = vld [vmem:[%s3769_s6 + $0x8] sm:$0xff] }
  0x8e   :  { %v3122_v45 = vpack.c.bf16 %v656_v28, %v655_v32  ;;  %v689_v28 = vld [vmem:[%s3769_s6 + $0x110] sm:$0xff]  ;;  %v3140_v32 = vpack.c.bf16 %v706_v56, %v705_v41  ;;  %v708_v41 = vld [vmem:[%s3769_s6 + $0x1a8] sm:$0xff] }
  0x8f   :  { %1994 = vmatpush1.bf16.msra.mxu0 %v3062_v62  ;;  %v658_v62 = vld [vmem:[%s3769_s6 + $0x18] sm:$0xff] }
  0x90   :  { %2122 = vmatpush1.bf16.msra.mxu1 %v3066_v58  ;;  %1996 = vmatprep.subr.bf16.mxu0 %v3068_v2  ;;  %3994 = vst [vmem:[#allocation92_spill] sm:$0xff] %v3122_v45  ;;  %v3128_v2 = vpack.c.bf16 %v674_v55, %v673_v20  ;;  %v657_v58 = vld [vmem:[%s3769_s6 + $0x10] sm:$0xff]  ;;  %3997 = vst [vmem:[#allocation95_spill] sm:$0xff] %v3140_v32  ;;  %v676_v20 = vld [vmem:[%s3769_s6 + $0xa8] sm:$0xff] }
  0x91   :  { %2124 = vmatprep.subr.bf16.mxu1 %v3071_v30  ;;  %v3126_v30 = vpack.c.bf16 %v688_v10, %v687_v29  ;;  %v690_v29 = vld [vmem:[%s3769_s6 + $0x118] sm:$0xff]  ;;  %v675_v10 = vld [vmem:[%s3769_s6 + $0xa0] sm:$0xff]  ;;  %v3160_v56 = vpack.c.bf16 %v658_v62, %v657_v58 }
  0x92   :  { %3996 = vst [vmem:[#allocation94_spill] sm:$0xff] %v3128_v2  ;;  %v707_v55 = vld [vmem:[%s3769_s6 + $0x1a0] sm:$0xff] }
  0x93   :  { %1998 = vmatpush1.bf16.msra.mxu0 %v3086_v37  ;;  %3995 = vst [vmem:[#allocation93_spill] sm:$0xff] %v3126_v30  ;;  %3998 = vst [vmem:[#allocation96_spill] sm:$0xff] %v3160_v56  ;;  %v691_v62 = vld [vmem:[%s3769_s6 + $0x120] sm:$0xff]  ;;  %v3178_v58 = vpack.c.bf16 %v708_v41, %v707_v55  ;;  %v710_v55 = vld [vmem:[%s3769_s6 + $0x1b8] sm:$0xff] }
  0x94   :  { %2126 = vmatpush1.bf16.msra.mxu1 %v3090_v47  ;;  %2128 = vmatprep.subr.bf16.mxu0 %v3092_v5  ;;  %v3166_v5 = vpack.c.bf16 %v676_v20, %v675_v10  ;;  %v659_v47 = vld [vmem:[%s3769_s6 + $0x20] sm:$0xff]  ;;  %v678_v10 = vld [vmem:[%s3769_s6 + $0xb8] sm:$0xff]  ;;  %v709_v20 = vld [vmem:[%s3769_s6 + $0x1b0] sm:$0xff] }
  0x95   :  { %2160 = vmatprep.subr.bf16.mxu1 %v3104_v23  ;;  %v3164_v23 = vpack.c.bf16 %v690_v29, %v689_v28  ;;  %4001 = vst [vmem:[#allocation99_spill] sm:$0xff] %v3178_v58  ;;  %v692_v28 = vld [vmem:[%s3769_s6 + $0x128] sm:$0xff]  ;;  %v677_v29 = vld [vmem:[%s3769_s6 + $0xb0] sm:$0xff] }
  0x96   :  { %492 = vmatmul.mubr.f32.vlgmr.msra.gmra.mrb[0].mxu0 %v2881_v48  ;;  %4000 = vst [vmem:[#allocation98_spill] sm:$0xff] %v3166_v5 }
  0x97   :  { %634 = vmatmul.mubr.f32.vlgmr.msra.gmra.mrb[0].mxu1 %v2881_v48  ;;  %2130 = vmatpush3.bf16.msra.mxu0 %v3122_v45  ;;  %3999 = vst [vmem:[#allocation97_spill] sm:$0xff] %v3164_v23  ;;  %v660_v48 = vld [vmem:[%s3769_s6 + $0x28] sm:$0xff]  ;;  %v662_v45 = vld [vmem:[%s3769_s6 + $0x38] sm:$0xff] }
  0x98   :  { %2162 = vmatpush3.bf16.msra.mxu1 %v3126_v30  ;;  %2132 = vmatprep.subr.bf16.mxu0 %v3128_v2  ;;  %v3196_v41 = vpack.c.bf16 %v660_v48, %v659_v47  ;;  %v3202_v2 = vpack.c.bf16 %v678_v10, %v677_v29  ;;  %v661_v30 = vld [vmem:[%s3769_s6 + $0x30] sm:$0xff]  ;;  %v3214_v48 = vpack.c.bf16 %v710_v55, %v709_v20  ;;  %v680_v29 = vld [vmem:[%s3769_s6 + $0xc8] sm:$0xff]  ;;  %v711_v10 = vld [vmem:[%s3769_s6 + $0x1c0] sm:$0xff] }
  0x99   :  { %2164 = vmatprep.subr.bf16.mxu1 %v3140_v32  ;;  %v3200_v32 = vpack.c.bf16 %v692_v28, %v691_v62  ;;  %v693_v47 = vld [vmem:[%s3769_s6 + $0x130] sm:$0xff]  ;;  %v694_v62 = vld [vmem:[%s3769_s6 + $0x138] sm:$0xff]  ;;  %v679_v28 = vld [vmem:[%s3769_s6 + $0xc0] sm:$0xff]  ;;  %v3232_v55 = vpack.c.bf16 %v662_v45, %v661_v30 }
  0x9a   :  { %4002 = vst [vmem:[#allocation100_spill] sm:$0xff] %v3196_v41  ;;  %4004 = vst [vmem:[#allocation102_spill] sm:$0xff] %v3202_v2  ;;  %v712_v20 = vld [vmem:[%s3769_s6 + $0x1c8] sm:$0xff]  ;;  %v695_v30 = vld [vmem:[%s3769_s6 + $0x140] sm:$0xff] }
  0x9b   :  { %2134 = vmatpush3.bf16.msra.mxu0 %v3160_v56  ;;  %4003 = vst [vmem:[#allocation101_spill] sm:$0xff] %v3200_v32  ;;  %4005 = vst [vmem:[#allocation103_spill] sm:$0xff] %v3214_v48  ;;  %v664_v56 = vld [vmem:[%s3769_s6 + $0x48] sm:$0xff]  ;;  %v3250_v45 = vpack.c.bf16 %v712_v20, %v711_v10  ;;  %v714_v10 = vld [vmem:[%s3769_s6 + $0x1d8] sm:$0xff] }
  0x9c   :  { %2166 = vmatpush3.bf16.msra.mxu1 %v3164_v23  ;;  %2136 = vmatprep.subr.bf16.mxu0 %v3166_v5  ;;  %4006 = vst [vmem:[#allocation104_spill] sm:$0xff] %v3232_v55  ;;  %v3238_v5 = vpack.c.bf16 %v680_v29, %v679_v28  ;;  %v663_v23 = vld [vmem:[%s3769_s6 + $0x40] sm:$0xff]  ;;  %v682_v28 = vld [vmem:[%s3769_s6 + $0xd8] sm:$0xff]  ;;  %v713_v29 = vld [vmem:[%s3769_s6 + $0x1d0] sm:$0xff] }
  0x9d   :  { %2168 = vmatprep.subr.bf16.mxu1 %v3178_v58  ;;  %v3236_v58 = vpack.c.bf16 %v694_v62, %v693_v47  ;;  %4009 = vst [vmem:[#allocation107_spill] sm:$0xff] %v3250_v45  ;;  %v696_v47 = vld [vmem:[%s3769_s6 + $0x148] sm:$0xff]  ;;  %v681_v62 = vld [vmem:[%s3769_s6 + $0xd0] sm:$0xff]  ;;  %v3268_v20 = vpack.c.bf16 %v664_v56, %v663_v23  ;;  %v3286_v56 = vpack.c.bf16 %v714_v10, %v713_v29 }
  0x9e   :  { %4008 = vst [vmem:[#allocation106_spill] sm:$0xff] %v3238_v5  ;;  %v697_v23 = vld [vmem:[%s3769_s6 + $0x150] sm:$0xff]  ;;  %v716_v29 = vld [vmem:[%s3769_s6 + $0x1e8] sm:$0xff] }
  0x9f   :  { %2138 = vmatpush3.bf16.msra.mxu0 %v3196_v41  ;;  %4007 = vst [vmem:[#allocation105_spill] sm:$0xff] %v3236_v58  ;;  %4010 = vst [vmem:[#allocation108_spill] sm:$0xff] %v3268_v20  ;;  %v666_v41 = vld [vmem:[%s3769_s6 + $0x58] sm:$0xff] }
  0xa0   :  { %2170 = vmatpush3.bf16.msra.mxu1 %v3200_v32  ;;  %2140 = vmatprep.subr.bf16.mxu0 %v3202_v2  ;;  %v3274_v2 = vpack.c.bf16 %v682_v28, %v681_v62  ;;  %v665_v32 = vld [vmem:[%s3769_s6 + $0x50] sm:$0xff]  ;;  %4013 = vst [vmem:[#allocation111_spill] sm:$0xff] %v3286_v56  ;;  %v684_v62 = vld [vmem:[%s3769_s6 + $0xe8] sm:$0xff]  ;;  %v715_v28 = vld [vmem:[%s3769_s6 + $0x1e0] sm:$0xff] }
  0xa1   :  { %2172 = vmatprep.subr.bf16.mxu1 %v3214_v48  ;;  %v3272_v48 = vpack.c.bf16 %v696_v47, %v695_v30  ;;  %v698_v30 = vld [vmem:[%s3769_s6 + $0x158] sm:$0xff]  ;;  %v683_v47 = vld [vmem:[%s3769_s6 + $0xe0] sm:$0xff]  ;;  %v3304_v10 = vpack.c.bf16 %v666_v41, %v665_v32  ;;  %v668_v41 = vld [vmem:[%s3769_s6 + $0x68] sm:$0xff] }
  0xa2   :  { %4012 = vst [vmem:[#allocation110_spill] sm:$0xff] %v3274_v2  ;;  %v667_v32 = vld [vmem:[%s3769_s6 + $0x60] sm:$0xff] }
  0xa3   :  { %2142 = vmatpush3.bf16.msra.mxu0 %v3232_v55  ;;  %4011 = vst [vmem:[#allocation109_spill] sm:$0xff] %v3272_v48  ;;  %4014 = vst [vmem:[#allocation112_spill] sm:$0xff] %v3304_v10 }
  0xa4   :  { %2174 = vmatpush3.bf16.msra.mxu1 %v3236_v58  ;;  %2144 = vmatprep.subr.bf16.mxu0 %v3238_v5  ;;  %v3310_v5 = vpack.c.bf16 %v684_v62, %v683_v47  ;;  %v3313_v58 = vpack.c.bf16 %v716_v29, %v715_v28  ;;  %v700_v47 = vld [vmem:[%s3769_s6 + $0x168] sm:$0xff]  ;;  %v685_v28 = vld [vmem:[%s3769_s6 + $0xf0] sm:$0xff]  ;;  %v686_v29 = vld [vmem:[%s3769_s6 + $0xf8] sm:$0xff] }
  0xa5   :  { %2176 = vmatprep.subr.bf16.mxu1 %v3250_v45  ;;  %v3308_v45 = vpack.c.bf16 %v698_v30, %v697_v23  ;;  %v699_v23 = vld [vmem:[%s3769_s6 + $0x160] sm:$0xff]  ;;  %v3328_v30 = vpack.c.bf16 %v668_v41, %v667_v32  ;;  %v717_v32 = vld [vmem:[%s3769_s6 + $0x1f0] sm:$0xff]  ;;  %v3346_v41 = vpack.c.bf16 %v686_v29, %v685_v28  ;;  %v702_v29 = vld [vmem:[%s3769_s6 + $0x178] sm:$0xff] }
  0xa6   :  { %4016 = vst [vmem:[#allocation114_spill] sm:$0xff] %v3310_v5  ;;  %4017 = vst [vmem:[#allocation115_spill] sm:$0xff] %v3313_v58  ;;  %v3333_v62 = vpack.c.bf16 %v700_v47, %v699_v23  ;;  %v718_v23 = vld [vmem:[%s3769_s6 + $0x1f8] sm:$0xff]  ;;  %v669_v47 = vld [vmem:[%s3769_s6 + $0x70] sm:$0xff] }
  0xa7   :  { %2146 = vmatpush3.bf16.msra.mxu0 %v3268_v20  ;;  %4015 = vst [vmem:[#allocation113_spill] sm:$0xff] %v3308_v45  ;;  %4018 = vst [vmem:[#allocation116_spill] sm:$0xff] %v3328_v30  ;;  %v701_v28 = vld [vmem:[%s3769_s6 + $0x170] sm:$0xff] }
  0xa8   :  { %2178 = vmatpush3.bf16.msra.mxu1 %v3272_v48  ;;  %2148 = vmatprep.subr.bf16.mxu0 %v3274_v2  ;;  %4019 = vst [vmem:[#allocation117_spill] sm:$0xff] %v3333_v62  ;;  %4020 = vst [vmem:[#allocation118_spill] sm:$0xff] %v3346_v41 }
  0xa9   :  { %2180 = vmatprep.subr.bf16.mxu1 %v3286_v56 }
  0xab   :  { %2150 = vmatpush3.bf16.msra.mxu0 %v3304_v10 }
  0xac   :  { %2182 = vmatpush3.bf16.msra.mxu1 %v3308_v45  ;;  %2152 = vmatprep.subr.bf16.mxu0 %v3310_v5 }
  0xad   :  { %2184 = vmatprep.subr.bf16.mxu1 %v3313_v58  ;;  %v3357_v58 = vpack.c.bf16 %v718_v23, %v717_v32  ;;  %v312_v32 = vld [vmem:[%s3768_s5] sm:$0xf]  ;;  %v3888_v23 = vsub.s32 2, %v2778_v38 }
  0xaf   :  { %2154 = vmatpush3.bf16.msra.mxu0 %v3328_v30  ;;  %v670_v30 = vld [vmem:[%s3769_s6 + $0x78] sm:$0xff]  ;;  %4021 = vst [vmem:[#allocation119_spill] sm:$0xff] %v3357_v58 }
  0xb0   :  { %2186 = vmatpush3.bf16.msra.mxu1 %v3333_v62  ;;  %v3359_v5 = vpack.c.bf16 %v670_v30, %v669_v47  ;;  %2156 = vmatprep.subr.bf16.mxu0 %v3346_v41  ;;  %v3368_v62 = vpack.c.bf16 %v702_v29, %v701_v28  ;;  %v3886_v30 = vsub.s32 0, %v2778_v38  ;;  %v3890_v47 = vsub.s32 1, %v2778_v38 }
  0xb1   :  { %2188 = vmatprep.subr.bf16.mxu1 %v3357_v58  ;;  %v3892_v41 = vsub.s32 3, %v2778_v38  ;;  %v4024_v28 = vlaneseq }
  0xb2   :  { %4022 = vst [vmem:[#allocation120_spill] sm:$0xff] %v3359_v5  ;;  %4023 = vst [vmem:[#allocation121_spill] sm:$0xff] %v3368_v62  ;;  %v3393_v58 = vrot.slane %v312_v32, %v3890_v47 }
  0xb3   :  { %2158 = vmatpush3.bf16.msra.mxu0 %v3359_v5  ;;  %v3381_v29 = vand.u32 127, %v4024_v28  ;;  %v3385_v5 = vrot.slane %v312_v32, %v3886_v30  ;;  %v3397_v45 = vrot.slane %v312_v32, %v3892_v41 }
  0xb4   :  { %2190 = vmatpush3.bf16.msra.mxu1 %v3368_v62  ;;  %v3389_v62 = vrot.slane %v312_v32, %v3888_v23 }
  0xb5   :  { %4025 = vst [vmem:[#allocation122_spill] sm:$0xff] %v3385_v5  ;;  %v3400_v10 = vadd.s32 128, %v3381_v29  ;;  %v3403_v56 = vadd.s32 384, %v3381_v29  ;;  %v3407_v48 = vadd.s32 256, %v3381_v29 }
  0xb7   :  { %4026 = vst [vmem:[#allocation123_spill] sm:$0xff] %v3407_v48 }
  0xe1   :  { %v646_v47 = vpop.permute.xlu0 %645 }
  0xe2   :  { %vm648_vm0 = vcmp.lt.s32.totalorder %v3400_v10, %v646_v47  ;;  %vm650_vm1 = vcmp.lt.s32.totalorder %v3403_v56, %v646_v47  ;;  %vm647_vm2 = vcmp.lt.s32.totalorder %v3381_v29, %v646_v47  ;;  %vm649_vm3 = vcmp.lt.s32.totalorder %v3407_v48, %v646_v47  ;;  %v869_v47 = vld [vmem:[%s3771_s8 + $0x10] sm:$0xff] }
 0x169   :  { %v493_v28 = vpop.f32.mrb[0].mxu0 }
 0x16a   :  { %v2543_v30 = vadd.f32 %v493_v28, %v3385_v5  ;;  %v635_v2 = vpop.f32.mrb[0].mxu1  ;;  %v495_v23 = vpop.f32.mrb[1].mxu0 }
 0x16b   :  { %v2545_v20 = vadd.f32 %v635_v2, %v3389_v62  ;;  %v2544_v32 = vadd.f32 %v495_v23, %v3393_v58  ;;  %v637_v41 = vpop.f32.mrb[1].mxu1  ;;  %v868_v2 = vld [vmem:[%s3771_s8 + $0x8] sm:$0xff] }
 0x16c   :  { %v2546_v38 = vadd.f32 %v637_v41, %v3397_v45  ;;  %v640_v28 = vmax.f32 %v2543_v30, 0.0  ;;  %v872_v41 = vld [vmem:[%s3771_s8 + $0x28] sm:$0xff]  ;;  %v870_v30 = vld [vmem:[%s3771_s8 + $0x18] sm:$0xff] }
 0x16d   :  { %v641_v55 = vmax.f32 %v2544_v32, 0.0  ;;  %v642_v37 = vmax.f32 %v2545_v20, 0.0  ;;  %v873_v32 = vld [vmem:[%s3771_s8 + $0x30] sm:$0xff] }
 0x16e   :  { %v643_v5 = vmax.f32 %v2546_v38, 0.0  ;;  %v3425_v38 = vpack.c.bf16 %v872_v41, %v868_v2  ;;  %v876_v2 = vld [vmem:[%s3771_s8 + $0x48] sm:$0xff] }
 0x16f   :  { %1719 = vmatprep.mubr.msk.f32.mxu0 %vm648_vm0, %v641_v55  ;;  %v871_v55 = vld [vmem:[%s3771_s8 + $0x20] sm:$0xff]  ;;  %v880_v41 = vld [vmem:[%s3771_s8 + $0x68] sm:$0xff] }
 0x170   :  { %1721 = vmatprep.mubr.msk.f32.mxu1 %vm650_vm1, %v643_v5  ;;  %1720 = vmatmul.mubr.msk.f32.vlgmr.msra.gmra.mrb[2].mxu0 %vm647_vm2, %v640_v28  ;;  %v874_v5 = vld [vmem:[%s3771_s8 + $0x38] sm:$0xff]  ;;  %v3447_v28 = vpack.c.bf16 %v873_v32, %v869_v47  ;;  %v879_v47 = vld [vmem:[%s3771_s8 + $0x60] sm:$0xff] }
 0x171   :  { %1722 = vmatmul.mubr.msk.f32.vlgmr.msra.gmra.mrb[2].mxu1 %vm649_vm3, %v642_v37  ;;  %v867_v37 = vld [vmem:[%s3771_s8] sm:$0xff]  ;;  %v3436_v20 = vpack.c.bf16 %v874_v5, %v870_v30  ;;  %2192 = vmatprep.subr.bf16.mxu0 %v3425_v38  ;;  %v878_v30 = vld [vmem:[%s3771_s8 + $0x58] sm:$0xff]  ;;  %v3461_v5 = vpack.c.bf16 %v880_v41, %v876_v2  ;;  %v877_v2 = vld [vmem:[%s3771_s8 + $0x50] sm:$0xff] }
 0x172   :  { %v3438_v23 = vpack.c.bf16 %v871_v55, %v867_v37  ;;  %4028 = vst [vmem:[#allocation125_spill] sm:$0xff] %v3447_v28  ;;  %v882_v37 = vld [vmem:[%s3771_s8 + $0x78] sm:$0xff]  ;;  %v875_v55 = vld [vmem:[%s3771_s8 + $0x40] sm:$0xff]  ;;  %v881_v41 = vld [vmem:[%s3771_s8 + $0x70] sm:$0xff] }
 0x173   :  { %2200 = vmatprep.subr.bf16.mxu1 %v3436_v20  ;;  %4029 = vst [vmem:[#allocation126_spill] sm:$0xff] %v3461_v5  ;;  %v3472_v32 = vpack.c.bf16 %v882_v37, %v878_v30  ;;  %v3902_v30 = vmov 0.0  }
 0x174   :  { %4027 = vst [vmem:[#allocation124_spill] sm:$0xff] %v3438_v23  ;;  %2194 = vmatpush1.bf16.msra.mxu0 %v3438_v23  ;;  %2202 = vmatpush1.bf16.msra.mxu1 %v3447_v28  ;;  %v3474_v23 = vpack.c.bf16 %v879_v47, %v875_v55  ;;  %v3483_v28 = vpack.c.bf16 %v881_v41, %v877_v2  ;;  %v3495_v47 = vld [vmem:[%s3770_s7] ss:$0 sm:$0xff] }
 0x175   :  { %4030 = vst [vmem:[#allocation127_spill] sm:$0xff] %v3472_v32  ;;  %2196 = vmatprep.subr.bf16.mxu0 %v3461_v5  ;;  %2204 = vmatprep.subr.bf16.mxu1 %v3472_v32 }
 0x176   :  { %4031 = vst [vmem:[#allocation128_spill] sm:$0xff] %v3474_v23  ;;  %4032 = vst [vmem:[#allocation129_spill] sm:$0xff] %v3483_v28  ;;  %973 = vmatprep.mubr.f32.mxu0 %v3902_v30  ;;  %1044 = vmatprep.mubr.f32.mxu1 %v3902_v30 }
 0x178   :  { %2198 = vmatpush1.bf16.msra.mxu0 %v3474_v23  ;;  %2206 = vmatpush1.bf16.msra.mxu1 %v3483_v28 }
 0x179   :  { %2208 = vmatprep.subr.bf16.mxu0 %v2667_v3  ;;  %2336 = vmatprep.subr.bf16.mxu1 %v2669_v7  ;;  %v3500_v3 = vld [vmem:[%s3764_s1] sm:$0xff] }
 0x17a   :  { %v3505_v7 = vrot.slane %v3500_v3, %v2793_v4 }
 0x17c   :  { %v1073_v48 = vcombine.high %v3505_v7, %v3505_v7 }
 0x243   :  { %v1763_v37 = vpop.f32.mrb[2].mxu0 }
 0x244   :  { %v1798_v55 = vpop.f32.mrb[2].mxu1  ;;  %v1764_v2 = vpop.f32.mrb[3].mxu0 }
 0x245   :  { %v1765_v41 = vadd.f32 %v1764_v2, %v1763_v37  ;;  %v1799_v23 = vpop.f32.mrb[3].mxu1  ;;  %v4074_v37 = vld [vmem:[#allocation47_spill] sm:$0xff]  ;;  %v4076_v2 = vld [vmem:[#allocation49_spill] sm:$0xff] }
 0x246   :  { %v1800_v28 = vadd.f32 %v1799_v23, %v1798_v55  ;;  %v4069_v23 = vld [vmem:[#allocation42_spill] sm:$0xff]  ;;  %v4075_v55 = vld [vmem:[#allocation48_spill] sm:$0xff] }
 0x247   :  { %v793_v30 = vadd.f32 %v1765_v41, %v3495_v47  ;;  %v4077_v41 = vld [vmem:[#allocation50_spill] sm:$0xff] }
 0x249   :  { %v863_v32 = vadd.f32 %v1800_v28, %v793_v30  ;;  %v4070_v28 = vld [vmem:[#allocation43_spill] sm:$0xff]  ;;  %v4073_v30 = vld [vmem:[#allocation46_spill] sm:$0xff] }
 0x24b   :  { %v866_v5 = vmax.f32 %v863_v32, 0.0  ;;  %v4072_v32 = vld [vmem:[#allocation45_spill] sm:$0xff] }
 0x24d   :  { %1723 = vmatmul.mubr.msk.f32.vlgmr.msra.gmra.mrb[4].mxu0 %vm905_vm4, %v866_v5  ;;  %1724 = vmatmul.mubr.msk.f32.vlgmr.msra.gmra.mrb[4].mxu1 %vm905_vm4, %v866_v5  ;;  %v4071_v5 = vld [vmem:[#allocation44_spill] sm:$0xff] }
 0x24e   :  { %2210 = vmatpush1.bf16.msra.mxu0 %v2671_v8  ;;  %2338 = vmatpush1.bf16.msra.mxu1 %v2674_v12  ;;  %v4033_v8 = vld [vmem:[#allocation6_spill] sm:$0xff]  ;;  %v4034_v12 = vld [vmem:[#allocation7_spill] sm:$0xff] }
 0x24f   :  { %2212 = vmatprep.subr.bf16.mxu0 %v2678_v16  ;;  %2340 = vmatprep.subr.bf16.mxu1 %v2680_v17  ;;  %v4035_v16 = vld [vmem:[#allocation8_spill] sm:$0xff]  ;;  %v4036_v17 = vld [vmem:[#allocation9_spill] sm:$0xff] }
 0x250   :  { %1143 = vmatprep.mubr.f32.mxu0 %v1073_v48  ;;  %1285 = vmatprep.mubr.f32.mxu1 %v1073_v48  ;;  %v4068_v48 = vld [vmem:[#allocation41_spill] sm:$0xff] }
 0x252   :  { %2214 = vmatpush1.bf16.msra.mxu0 %v2683_v21  ;;  %2342 = vmatpush1.bf16.msra.mxu1 %v2687_v26  ;;  %v4037_v21 = vld [vmem:[#allocation10_spill] sm:$0xff]  ;;  %v4038_v26 = vld [vmem:[#allocation11_spill] sm:$0xff] }
 0x253   :  { %2216 = vmatprep.subr.bf16.mxu0 %v2689_v27  ;;  %2344 = vmatprep.subr.bf16.mxu1 %v2691_v31  ;;  %v4039_v27 = vld [vmem:[#allocation12_spill] sm:$0xff]  ;;  %v4040_v31 = vld [vmem:[#allocation13_spill] sm:$0xff] }
 0x256   :  { %2218 = vmatpush1.bf16.msra.mxu0 %v2694_v35  ;;  %2346 = vmatpush1.bf16.msra.mxu1 %v2698_v39  ;;  %v4041_v35 = vld [vmem:[#allocation14_spill] sm:$0xff]  ;;  %v4042_v39 = vld [vmem:[#allocation15_spill] sm:$0xff] }
 0x257   :  { %2220 = vmatprep.subr.bf16.mxu0 %v2700_v40  ;;  %2348 = vmatprep.subr.bf16.mxu1 %v2703_v44  ;;  %v4043_v40 = vld [vmem:[#allocation16_spill] sm:$0xff]  ;;  %v4044_v44 = vld [vmem:[#allocation17_spill] sm:$0xff] }
 0x25a   :  { %2222 = vmatpush1.bf16.msra.mxu0 %v2706_v51  ;;  %2350 = vmatpush1.bf16.msra.mxu1 %v2710_v52  ;;  %v4045_v51 = vld [vmem:[#allocation18_spill] sm:$0xff]  ;;  %v4046_v52 = vld [vmem:[#allocation19_spill] sm:$0xff] }
 0x25b   :  { %2224 = vmatprep.subr.bf16.mxu0 %v2712_v53  ;;  %2352 = vmatprep.subr.bf16.mxu1 %v2715_v57  ;;  %v4047_v53 = vld [vmem:[#allocation20_spill] sm:$0xff]  ;;  %v4048_v57 = vld [vmem:[#allocation21_spill] sm:$0xff] }
 0x25e   :  { %2226 = vmatpush1.bf16.msra.mxu0 %v2718_v63  ;;  %2354 = vmatpush1.bf16.msra.mxu1 %v2722_v0  ;;  %v4049_v63 = vld [vmem:[#allocation22_spill] sm:$0xff]  ;;  %v4050_v0 = vld [vmem:[#allocation23_spill] sm:$0xff] }
 0x25f   :  { %2228 = vmatprep.subr.bf16.mxu0 %v2724_v1  ;;  %2356 = vmatprep.subr.bf16.mxu1 %v2727_v6  ;;  %v4051_v1 = vld [vmem:[#allocation24_spill] sm:$0xff]  ;;  %v1058_v6 = vcombine.high %v3500_v3, %v3500_v3  ;;  %v4078_v3 = vld [vmem:[#allocation51_spill] sm:$0xff] }
 0x262   :  { %2230 = vmatpush1.bf16.msra.mxu0 %v2730_v15  ;;  %2358 = vmatpush1.bf16.msra.mxu1 %v2734_v18  ;;  %v4052_v15 = vld [vmem:[#allocation25_spill] sm:$0xff]  ;;  %v4053_v18 = vld [vmem:[#allocation26_spill] sm:$0xff] }
 0x263   :  { %2232 = vmatprep.subr.bf16.mxu0 %v2736_v19  ;;  %2360 = vmatprep.subr.bf16.mxu1 %v2739_v24  ;;  %v4054_v19 = vld [vmem:[#allocation27_spill] sm:$0xff]  ;;  %v4055_v24 = vld [vmem:[#allocation28_spill] sm:$0xff] }
 0x266   :  { %2234 = vmatpush1.bf16.msra.mxu0 %v2742_v33  ;;  %2362 = vmatpush1.bf16.msra.mxu1 %v2746_v34  ;;  %v3574_v33 = vrot.slane %v1058_v6, %v2793_v4  ;;  %v4056_v34 = vld [vmem:[#allocation29_spill] sm:$0xff]  ;;  %v4067_v4 = vld [vmem:[#allocation40_spill] sm:$0xff] }
 0x267   :  { %2236 = vmatprep.subr.bf16.mxu0 %v2748_v36  ;;  %2364 = vmatprep.subr.bf16.mxu1 %v2751_v42  ;;  %v4057_v36 = vld [vmem:[#allocation30_spill] sm:$0xff]  ;;  %v4058_v42 = vld [vmem:[#allocation31_spill] sm:$0xff]  ;;  %v4100_v6 = vld [vmem:[#allocation73_spill] sm:$0xff] }
 0x26a   :  { %2238 = vmatpush1.bf16.msra.mxu0 %v2754_v49  ;;  %2366 = vmatpush1.bf16.msra.mxu1 %v2758_v50  ;;  %v4059_v49 = vld [vmem:[#allocation32_spill] sm:$0xff]  ;;  %v1074_v50 = vcombine.high %v3574_v33, %v3574_v33 }
 0x26b   :  { %2240 = vmatprep.subr.bf16.mxu0 %v2760_v54  ;;  %2368 = vmatprep.subr.bf16.mxu1 %v2763_v59  ;;  %v4060_v54 = vld [vmem:[#allocation33_spill] sm:$0xff]  ;;  %v4061_v59 = vld [vmem:[#allocation34_spill] sm:$0xff] }
 0x26e   :  { %2242 = vmatpush1.bf16.msra.mxu0 %v2766_v11  ;;  %2370 = vmatpush1.bf16.msra.mxu1 %v2770_v13  ;;  %v4062_v11 = vld [vmem:[#allocation35_spill] sm:$0xff]  ;;  %v4063_v13 = vld [vmem:[#allocation36_spill] sm:$0xff] }
 0x26f   :  { %2244 = vmatprep.subr.bf16.mxu0 %v2772_v14  ;;  %2372 = vmatprep.subr.bf16.mxu1 %v2775_v25  ;;  %v4064_v14 = vld [vmem:[#allocation37_spill] sm:$0xff]  ;;  %v4065_v25 = vld [vmem:[#allocation38_spill] sm:$0xff] }
 0x272   :  { %2246 = vmatpush1.bf16.msra.mxu0 %v2781_v43  ;;  %2374 = vmatpush1.bf16.msra.mxu1 %v4033_v8  ;;  %v4066_v43 = vld [vmem:[#allocation39_spill] sm:$0xff]  ;;  %v4080_v8 = vld [vmem:[#allocation53_spill] sm:$0xff] }
 0x273   :  { %2248 = vmatprep.subr.bf16.mxu0 %v4034_v12  ;;  %2376 = vmatprep.subr.bf16.mxu1 %v4035_v16  ;;  %v4081_v12 = vld [vmem:[#allocation54_spill] sm:$0xff]  ;;  %v4082_v16 = vld [vmem:[#allocation55_spill] sm:$0xff] }
 0x276   :  { %2250 = vmatpush1.bf16.msra.mxu0 %v4036_v17  ;;  %2378 = vmatpush1.bf16.msra.mxu1 %v4037_v21  ;;  %v4083_v17 = vld [vmem:[#allocation56_spill] sm:$0xff]  ;;  %v4084_v21 = vld [vmem:[#allocation57_spill] sm:$0xff] }
 0x277   :  { %2252 = vmatprep.subr.bf16.mxu0 %v4038_v26  ;;  %2380 = vmatprep.subr.bf16.mxu1 %v4039_v27  ;;  %v4085_v26 = vld [vmem:[#allocation58_spill] sm:$0xff]  ;;  %v4086_v27 = vld [vmem:[#allocation59_spill] sm:$0xff] }
 0x27a   :  { %2254 = vmatpush1.bf16.msra.mxu0 %v4040_v31  ;;  %2382 = vmatpush1.bf16.msra.mxu1 %v4041_v35  ;;  %v4087_v31 = vld [vmem:[#allocation60_spill] sm:$0xff]  ;;  %v4088_v35 = vld [vmem:[#allocation61_spill] sm:$0xff] }
 0x27b   :  { %2256 = vmatprep.subr.bf16.mxu0 %v4042_v39  ;;  %2384 = vmatprep.subr.bf16.mxu1 %v4043_v40  ;;  %v4089_v39 = vld [vmem:[#allocation62_spill] sm:$0xff]  ;;  %v4090_v40 = vld [vmem:[#allocation63_spill] sm:$0xff] }
 0x27e   :  { %2258 = vmatpush1.bf16.msra.mxu0 %v4044_v44  ;;  %2386 = vmatpush1.bf16.msra.mxu1 %v4045_v51  ;;  %v4092_v44 = vld [vmem:[#allocation65_spill] sm:$0xff]  ;;  %v4093_v51 = vld [vmem:[#allocation66_spill] sm:$0xff] }
 0x27f   :  { %2260 = vmatprep.subr.bf16.mxu0 %v4046_v52  ;;  %2388 = vmatprep.subr.bf16.mxu1 %v4047_v53  ;;  %v4094_v52 = vld [vmem:[#allocation67_spill] sm:$0xff]  ;;  %v4095_v53 = vld [vmem:[#allocation68_spill] sm:$0xff] }
 0x282   :  { %2262 = vmatpush1.bf16.msra.mxu0 %v4048_v57  ;;  %2390 = vmatpush1.bf16.msra.mxu1 %v4049_v63  ;;  %v4096_v57 = vld [vmem:[#allocation69_spill] sm:$0xff]  ;;  %v4097_v63 = vld [vmem:[#allocation70_spill] sm:$0xff] }
 0x283   :  { %2264 = vmatprep.subr.bf16.mxu0 %v4050_v0  ;;  %2392 = vmatprep.subr.bf16.mxu1 %v4051_v1  ;;  %v4098_v0 = vld [vmem:[#allocation71_spill] sm:$0xff]  ;;  %v4099_v1 = vld [vmem:[#allocation72_spill] sm:$0xff] }
 0x286   :  { %2266 = vmatpush1.bf16.msra.mxu0 %v4052_v15  ;;  %2394 = vmatpush1.bf16.msra.mxu1 %v4053_v18  ;;  %v4101_v15 = vld [vmem:[#allocation74_spill] sm:$0xff]  ;;  %v4102_v18 = vld [vmem:[#allocation75_spill] sm:$0xff] }
 0x287   :  { %2268 = vmatprep.subr.bf16.mxu0 %v4054_v19  ;;  %2396 = vmatprep.subr.bf16.mxu1 %v4055_v24  ;;  %v4103_v19 = vld [vmem:[#allocation76_spill] sm:$0xff]  ;;  %v4104_v24 = vld [vmem:[#allocation77_spill] sm:$0xff] }
 0x28a   :  { %2270 = vmatpush1.bf16.msra.mxu0 %v4056_v34  ;;  %2398 = vmatpush1.bf16.msra.mxu1 %v4057_v36  ;;  %v4105_v34 = vld [vmem:[#allocation78_spill] sm:$0xff]  ;;  %v4106_v36 = vld [vmem:[#allocation79_spill] sm:$0xff] }
 0x28b   :  { %2272 = vmatprep.subr.bf16.mxu0 %v4058_v42  ;;  %2400 = vmatprep.subr.bf16.mxu1 %v4059_v49  ;;  %v4107_v42 = vld [vmem:[#allocation80_spill] sm:$0xff]  ;;  %v4108_v49 = vld [vmem:[#allocation81_spill] sm:$0xff] }
 0x28d   :  { %1144 = vmatmul.mubr.f32.vlgmr.msra.gmra.mrb[6].mxu0 %v3505_v7  ;;  %1286 = vmatmul.mubr.f32.vlgmr.msra.gmra.mrb[6].mxu1 %v3505_v7  ;;  %v4079_v7 = vld [vmem:[#allocation52_spill] sm:$0xff] }
 0x28e   :  { %2274 = vmatpush1.bf16.msra.mxu0 %v4060_v54  ;;  %2402 = vmatpush1.bf16.msra.mxu1 %v4061_v59  ;;  %v4110_v54 = vld [vmem:[#allocation83_spill] sm:$0xff]  ;;  %v4111_v59 = vld [vmem:[#allocation84_spill] sm:$0xff] }
 0x28f   :  { %2276 = vmatprep.subr.bf16.mxu0 %v4062_v11  ;;  %2404 = vmatprep.subr.bf16.mxu1 %v4063_v13  ;;  %v4112_v11 = vld [vmem:[#allocation85_spill] sm:$0xff]  ;;  %v4113_v13 = vld [vmem:[#allocation86_spill] sm:$0xff] }
 0x290   :  { %1214 = vmatprep.mubr.f32.mxu0 %v1074_v50  ;;  %1356 = vmatprep.mubr.f32.mxu1 %v1074_v50  ;;  %v4109_v50 = vld [vmem:[#allocation82_spill] sm:$0xff] }
 0x292   :  { %2278 = vmatpush1.bf16.msra.mxu0 %v4064_v14  ;;  %2406 = vmatpush1.bf16.msra.mxu1 %v4065_v25  ;;  %v4114_v14 = vld [vmem:[#allocation87_spill] sm:$0xff]  ;;  %v4115_v25 = vld [vmem:[#allocation88_spill] sm:$0xff] }
 0x293   :  { %2280 = vmatprep.subr.bf16.mxu0 %v4066_v43  ;;  %2408 = vmatprep.subr.bf16.mxu1 %v4067_v4  ;;  %v4117_v43 = vld [vmem:[#allocation90_spill] sm:$0xff] }
 0x294   :  { %v4121_v4 = vld [vmem:[#allocation94_spill] sm:$0xff] }
 0x296   :  { %2282 = vmatpush1.bf16.msra.mxu0 %v4068_v48  ;;  %2410 = vmatpush1.bf16.msra.mxu1 %v4069_v23  ;;  %v4122_v48 = vld [vmem:[#allocation95_spill] sm:$0xff]  ;;  %v4123_v23 = vld [vmem:[#allocation96_spill] sm:$0xff] }
 0x297   :  { %2284 = vmatprep.subr.bf16.mxu0 %v4070_v28  ;;  %2412 = vmatprep.subr.bf16.mxu1 %v4071_v5  ;;  %v4124_v28 = vld [vmem:[#allocation97_spill] sm:$0xff]  ;;  %v4125_v5 = vld [vmem:[#allocation98_spill] sm:$0xff] }
 0x29a   :  { %2286 = vmatpush1.bf16.msra.mxu0 %v4072_v32  ;;  %2414 = vmatpush1.bf16.msra.mxu1 %v4073_v30  ;;  %v4126_v32 = vld [vmem:[#allocation99_spill] sm:$0xff]  ;;  %v4127_v30 = vld [vmem:[#allocation100_spill] sm:$0xff] }
 0x29b   :  { %2288 = vmatprep.subr.bf16.mxu0 %v4074_v37  ;;  %2416 = vmatprep.subr.bf16.mxu1 %v4075_v55  ;;  %v4128_v37 = vld [vmem:[#allocation101_spill] sm:$0xff]  ;;  %v4130_v55 = vld [vmem:[#allocation103_spill] sm:$0xff] }
 0x29e   :  { %2290 = vmatpush1.bf16.msra.mxu0 %v4076_v2  ;;  %2418 = vmatpush1.bf16.msra.mxu1 %v4077_v41  ;;  %v4131_v2 = vld [vmem:[#allocation104_spill] sm:$0xff]  ;;  %v4132_v41 = vld [vmem:[#allocation105_spill] sm:$0xff] }
 0x29f   :  { %2292 = vmatprep.subr.bf16.mxu0 %v4078_v3  ;;  %2420 = vmatprep.subr.bf16.mxu1 %v4079_v7  ;;  %v4133_v3 = vld [vmem:[#allocation106_spill] sm:$0xff]  ;;  %v4134_v7 = vld [vmem:[#allocation107_spill] sm:$0xff] }
 0x2a2   :  { %2294 = vmatpush1.bf16.msra.mxu0 %v4080_v8  ;;  %2422 = vmatpush1.bf16.msra.mxu1 %v2952_v22  ;;  %v4091_v22 = vld [vmem:[#allocation64_spill] sm:$0xff] }
 0x2a3   :  { %2296 = vmatprep.subr.bf16.mxu0 %v4081_v12  ;;  %2424 = vmatprep.subr.bf16.mxu1 %v4082_v16  ;;  %v4135_v8 = vld [vmem:[#allocation108_spill] sm:$0xff]  ;;  %v4136_v12 = vld [vmem:[#allocation109_spill] sm:$0xff]  ;;  %v4137_v16 = vld [vmem:[#allocation110_spill] sm:$0xff] }
 0x2a6   :  { %2298 = vmatpush1.bf16.msra.mxu0 %v4083_v17  ;;  %2426 = vmatpush1.bf16.msra.mxu1 %v4084_v21  ;;  %v4138_v17 = vld [vmem:[#allocation111_spill] sm:$0xff]  ;;  %v4139_v21 = vld [vmem:[#allocation112_spill] sm:$0xff] }
 0x2a7   :  { %2300 = vmatprep.subr.bf16.mxu0 %v4085_v26  ;;  %2428 = vmatprep.subr.bf16.mxu1 %v4086_v27  ;;  %v4140_v26 = vld [vmem:[#allocation113_spill] sm:$0xff]  ;;  %v4141_v27 = vld [vmem:[#allocation114_spill] sm:$0xff] }
 0x2aa   :  { %2302 = vmatpush1.bf16.msra.mxu0 %v4087_v31  ;;  %2430 = vmatpush1.bf16.msra.mxu1 %v4088_v35  ;;  %v4142_v31 = vld [vmem:[#allocation115_spill] sm:$0xff]  ;;  %v4143_v35 = vld [vmem:[#allocation116_spill] sm:$0xff] }
 0x2ab   :  { %2304 = vmatprep.subr.bf16.mxu0 %v4089_v39  ;;  %2432 = vmatprep.subr.bf16.mxu1 %v4090_v40  ;;  %v4144_v39 = vld [vmem:[#allocation117_spill] sm:$0xff]  ;;  %v4145_v40 = vld [vmem:[#allocation118_spill] sm:$0xff] }
 0x2ae   :  { %2306 = vmatpush1.bf16.msra.mxu0 %v4091_v22  ;;  %2434 = vmatpush1.bf16.msra.mxu1 %v4092_v44  ;;  %v4146_v22 = vld [vmem:[#allocation119_spill] sm:$0xff]  ;;  %v4147_v44 = vld [vmem:[#allocation120_spill] sm:$0xff] }
 0x2af   :  { %2308 = vmatprep.subr.bf16.mxu0 %v4093_v51  ;;  %2436 = vmatprep.subr.bf16.mxu1 %v4094_v52  ;;  %v4148_v51 = vld [vmem:[#allocation121_spill] sm:$0xff] }
 0x2b0   :  { %v883_v52 = vld [vmem:[%s3772_s9] sm:$0xf] }
 0x2b2   :  { %2310 = vmatpush1.bf16.msra.mxu0 %v4095_v53  ;;  %2438 = vmatpush1.bf16.msra.mxu1 %v4096_v57  ;;  %v4149_v53 = vld [vmem:[#allocation5_spill] sm:$0xff] }
 0x2b3   :  { %2312 = vmatprep.subr.bf16.mxu0 %v4097_v63  ;;  %2440 = vmatprep.subr.bf16.mxu1 %v4098_v0  ;;  %v4150_v57 = vsub.s32 0, %v4149_v53  ;;  %v4151_v0 = vsub.s32 2, %v4149_v53 }
 0x2b5   :  { %v3687_v63 = vrot.slane %v883_v52, %v4150_v57 }
 0x2b6   :  { %2314 = vmatpush1.bf16.msra.mxu0 %v4099_v1  ;;  %2442 = vmatpush1.bf16.msra.mxu1 %v4100_v6  ;;  %v3691_v1 = vrot.slane %v883_v52, %v4151_v0  ;;  %v4152_v6 = vsub.s32 1, %v4149_v53 }
 0x2b7   :  { %2316 = vmatprep.subr.bf16.mxu0 %v4101_v15  ;;  %2444 = vmatprep.subr.bf16.mxu1 %v4102_v18 }
 0x2b8   :  { %v3695_v15 = vrot.slane %v883_v52, %v4152_v6 }
 0x2ba   :  { %2318 = vmatpush1.bf16.msra.mxu0 %v4103_v19  ;;  %2446 = vmatpush1.bf16.msra.mxu1 %v4104_v24 }
 0x2bb   :  { %2320 = vmatprep.subr.bf16.mxu0 %v4105_v34  ;;  %2448 = vmatprep.subr.bf16.mxu1 %v4106_v36 }
 0x2be   :  { %2322 = vmatpush1.bf16.msra.mxu0 %v4107_v42  ;;  %2450 = vmatpush1.bf16.msra.mxu1 %v4108_v49 }
 0x2bf   :  { %2324 = vmatprep.subr.bf16.mxu0 %v3044_v61  ;;  %2452 = vmatprep.subr.bf16.mxu1 %v4109_v50  ;;  %v4116_v61 = vld [vmem:[#allocation89_spill] sm:$0xff] }
 0x2c2   :  { %2326 = vmatpush1.bf16.msra.mxu0 %v3050_v46  ;;  %2454 = vmatpush1.bf16.msra.mxu1 %v3054_v60  ;;  %v4118_v46 = vld [vmem:[#allocation91_spill] sm:$0xff]  ;;  %v4119_v60 = vld [vmem:[#allocation92_spill] sm:$0xff] }
 0x2c3   :  { %2328 = vmatprep.subr.bf16.mxu0 %v3056_v9  ;;  %2456 = vmatprep.subr.bf16.mxu1 %v4110_v54  ;;  %v4120_v9 = vld [vmem:[#allocation93_spill] sm:$0xff] }
 0x2c6   :  { %2330 = vmatpush1.bf16.msra.mxu0 %v4111_v59  ;;  %2458 = vmatpush1.bf16.msra.mxu1 %v4112_v11 }
 0x2c7   :  { %2332 = vmatprep.subr.bf16.mxu0 %v4113_v13  ;;  %2460 = vmatprep.subr.bf16.mxu1 %v4114_v14 }
 0x2ca   :  { %2334 = vmatpush1.bf16.msra.mxu0 %v4115_v25  ;;  %2462 = vmatpush1.bf16.msra.mxu1 %v4116_v61 }
 0x2cb   :  { %2464 = vmatprep.subr.bf16.mxu0 %v4117_v43  ;;  %2496 = vmatprep.subr.bf16.mxu1 %v4118_v46 }
 0x2cd   :  { %1215 = vmatmul.mubr.f32.vlgmr.msra.gmra.mrb[6].mxu0 %v3574_v33  ;;  %1357 = vmatmul.mubr.f32.vlgmr.msra.gmra.mrb[6].mxu1 %v3574_v33  ;;  %v4129_v33 = vld [vmem:[#allocation102_spill] sm:$0xff] }
 0x2ce   :  { %2466 = vmatpush3.bf16.msra.mxu0 %v4119_v60  ;;  %2498 = vmatpush3.bf16.msra.mxu1 %v4120_v9 }
 0x2cf   :  { %2468 = vmatprep.subr.bf16.mxu0 %v4121_v4  ;;  %2500 = vmatprep.subr.bf16.mxu1 %v4122_v48 }
 0x2d2   :  { %2470 = vmatpush3.bf16.msra.mxu0 %v4123_v23  ;;  %2502 = vmatpush3.bf16.msra.mxu1 %v4124_v28 }
 0x2d3   :  { %2472 = vmatprep.subr.bf16.mxu0 %v4125_v5  ;;  %2504 = vmatprep.subr.bf16.mxu1 %v4126_v32 }
 0x2d6   :  { %2474 = vmatpush3.bf16.msra.mxu0 %v4127_v30  ;;  %2506 = vmatpush3.bf16.msra.mxu1 %v4128_v37  ;;  %v4154_v30 = vld [vmem:[#allocation122_spill] sm:$0xff] }
 0x2d7   :  { %2476 = vmatprep.subr.bf16.mxu0 %v4129_v33  ;;  %2508 = vmatprep.subr.bf16.mxu1 %v4130_v55 }
 0x2da   :  { %2478 = vmatpush3.bf16.msra.mxu0 %v4131_v2  ;;  %2510 = vmatpush3.bf16.msra.mxu1 %v4132_v41  ;;  %v1369_v41 = vpop.permute.xlu0 %1368 }
 0x2db   :  { %2480 = vmatprep.subr.bf16.mxu0 %v4133_v3  ;;  %2512 = vmatprep.subr.bf16.mxu1 %v4134_v7  ;;  %vm1371_vm6 = vcmp.lt.s32.totalorder %v3400_v10, %v1369_v41  ;;  %vm1373_vm7 = vcmp.lt.s32.totalorder %v3403_v56, %v1369_v41  ;;  %vm1370_vm8 = vcmp.lt.s32.totalorder %v3381_v29, %v1369_v41  ;;  %v4161_v56 = vld [vmem:[#allocation128_spill] sm:$0xff]  ;;  %v4162_v10 = vld [vmem:[#allocation129_spill] sm:$0xff] }
 0x2de   :  { %2482 = vmatpush3.bf16.msra.mxu0 %v4135_v8  ;;  %2514 = vmatpush3.bf16.msra.mxu1 %v4136_v12 }
 0x2df   :  { %2484 = vmatprep.subr.bf16.mxu0 %v4137_v16  ;;  %2516 = vmatprep.subr.bf16.mxu1 %v4138_v17 }
 0x2e2   :  { %2486 = vmatpush3.bf16.msra.mxu0 %v4139_v21  ;;  %2518 = vmatpush3.bf16.msra.mxu1 %v4140_v26  ;;  %v4156_v21 = vld [vmem:[#allocation124_spill] sm:$0xff]  ;;  %v4159_v26 = vld [vmem:[#allocation127_spill] sm:$0xff] }
 0x2e3   :  { %2488 = vmatprep.subr.bf16.mxu0 %v4141_v27  ;;  %2520 = vmatprep.subr.bf16.mxu1 %v4142_v31  ;;  %v4160_v27 = vmov 0.0  }
 0x2e6   :  { %2490 = vmatpush3.bf16.msra.mxu0 %v4143_v35  ;;  %2522 = vmatpush3.bf16.msra.mxu1 %v4144_v39 }
 0x2e7   :  { %2492 = vmatprep.subr.bf16.mxu0 %v4145_v40  ;;  %2524 = vmatprep.subr.bf16.mxu1 %v4146_v22 }
 0x2ea   :  { %2494 = vmatpush3.bf16.msra.mxu0 %v4147_v44  ;;  %2526 = vmatpush3.bf16.msra.mxu1 %v4148_v51 }
 0x2eb   :  { %2528 = vmatprep.subr.bf16.mxu0 %v3425_v38  ;;  %2536 = vmatprep.subr.bf16.mxu1 %v3436_v20  ;;  %v4153_v38 = vsub.s32 3, %v4149_v53 }
 0x2ed   :  { %v3699_v18 = vrot.slane %v883_v52, %v4153_v38 }
 0x320   :  { %v975_v20 = vpop.f32.mrb[4].mxu0  ;;  %v1046_v19 = vpop.f32.mrb[4].mxu1 }
 0x321   :  { %v976_v24 = vadd.f32 %v975_v20, %v3687_v63  ;;  %v1047_v34 = vadd.f32 %v1046_v19, %v3691_v1  ;;  %v977_v36 = vpop.f32.mrb[5].mxu0  ;;  %v1048_v42 = vpop.f32.mrb[5].mxu1 }
 0x322   :  { %v978_v49 = vadd.f32 %v977_v36, %v3695_v15  ;;  %v1049_v50 = vadd.f32 %v1048_v42, %v3699_v18 }
 0x323   :  { %v3705_v54 = vmax.f32 %v976_v24, 0.0  ;;  %v3707_v59 = vmax.f32 %v1047_v34, 0.0 }
 0x324   :  { %v3709_v11 = vmax.f32 %v978_v49, 0.0  ;;  %v3711_v13 = vmax.f32 %v1049_v50, 0.0 }
 0x325   :  { %v1682_v14 = vmul.f32 %v3705_v54, %v3705_v54  ;;  %v1684_v25 = vmul.f32 %v3707_v59, %v3707_v59 }
 0x326   :  { %v1683_v61 = vmul.f32 %v3709_v11, %v3709_v11  ;;  %v1685_v46 = vmul.f32 %v3711_v13, %v3711_v13 }
 0x327   :  { %v1686_v43 = vsel %vm1672_vm5, %v1682_v14, 0.0  ;;  %v1689_v4 = vsel %vm1672_vm5, %v1684_v25, 0.0 }
 0x328   :  { %v1687_v60 = vsel %vm1672_vm5, %v1683_v61, 0.0  ;;  %v1691_v23 = vsel %vm1672_vm5, %v1685_v46, 0.0 }
 0x329   :  { %v1688_v9 = vadd.f32 %v1687_v60, %v1686_v43 }
 0x32b   :  { %v1690_v48 = vadd.f32 %v1689_v4, %v1688_v9 }
 0x32d   :  { %v1692_v28 = vadd.f32 %v1691_v23, %v1690_v48 }
 0x32f   :  { %1693 = vadd.xlane.f32.xlu1 %v1692_v28 }
 0x3a0   :  { %v1216_v5 = vpop.f32.mrb[6].mxu0  ;;  %v1358_v32 = vpop.f32.mrb[6].mxu1 }
 0x3a1   :  { %v2547_v37 = vadd.f32 %v1216_v5, %v4154_v30  ;;  %v2549_v33 = vadd.f32 %v1358_v32, %v3389_v62  ;;  %v1218_v55 = vpop.f32.mrb[7].mxu0  ;;  %v1360_v2 = vpop.f32.mrb[7].mxu1  ;;  %v4155_v62 = vld [vmem:[#allocation123_spill] sm:$0xff] }
 0x3a2   :  { %v2548_v3 = vadd.f32 %v1218_v55, %v3393_v58  ;;  %v2550_v7 = vadd.f32 %v1360_v2, %v3397_v45  ;;  %vm1372_vm9 = vcmp.lt.s32.totalorder %v4155_v62, %v1369_v41  ;;  %v4157_v58 = vld [vmem:[#allocation125_spill] sm:$0xff]  ;;  %v4158_v45 = vld [vmem:[#allocation126_spill] sm:$0xff] }
 0x3a3   :  { %v1363_v16 = vmax.f32 %v2547_v37, 0.0  ;;  %v1365_v17 = vmax.f32 %v2549_v33, 0.0 }
 0x3a4   :  { %v1364_v8 = vmax.f32 %v2548_v3, 0.0  ;;  %v1366_v12 = vmax.f32 %v2550_v7, 0.0 }
 0x3a6   :  { %1725 = vmatprep.mubr.msk.f32.mxu0 %vm1371_vm6, %v1364_v8  ;;  %1727 = vmatprep.mubr.msk.f32.mxu1 %vm1373_vm7, %v1366_v12 }
 0x3a7   :  { %1726 = vmatmul.mubr.msk.f32.vlgmr.msra.gmra.mrb[8].mxu0 %vm1370_vm8, %v1363_v16  ;;  %1728 = vmatmul.mubr.msk.f32.vlgmr.msra.gmra.mrb[8].mxu1 %vm1372_vm9, %v1365_v17 }
 0x3a8   :  { %2530 = vmatpush1.bf16.msra.mxu0 %v4156_v21  ;;  %2538 = vmatpush1.bf16.msra.mxu1 %v4157_v58 }
 0x3a9   :  { %2532 = vmatprep.subr.bf16.mxu0 %v4158_v45  ;;  %2540 = vmatprep.subr.bf16.mxu1 %v4159_v26 }
 0x3aa   :  { %1586 = vmatprep.mubr.f32.mxu0 %v4160_v27  ;;  %1657 = vmatprep.mubr.f32.mxu1 %v4160_v27 }
 0x3ac   :  { %2534 = vmatpush1.bf16.msra.mxu0 %v4161_v56  ;;  %2542 = vmatpush1.bf16.msra.mxu1 %v4162_v10 }
 0x3bc   :  { %v1694_v30 = vpop.xlane.xlu1 %1693 }
 0x47a   :  { %v1833_v29 = vpop.f32.mrb[8].mxu0  ;;  %v1868_v31 = vpop.f32.mrb[8].mxu1 }
 0x47b   :  { %v1834_v35 = vpop.f32.mrb[9].mxu0  ;;  %v1869_v39 = vpop.f32.mrb[9].mxu1 }
 0x47c   :  { %v1835_v40 = vadd.f32 %v1834_v35, %v1833_v29  ;;  %v1870_v22 = vadd.f32 %v1869_v39, %v1868_v31 }
 0x47e   :  { %v1445_v44 = vadd.f32 %v1835_v40, %v3495_v47 }
 0x480   :  { %v1515_v51 = vadd.f32 %v1870_v22, %v1445_v44 }
 0x482   :  { %v1518_v52 = vmax.f32 %v1515_v51, 0.0 }
 0x484   :  { %1729 = vmatmul.mubr.msk.f32.vlgmr.msra.gmra.mrb[10].mxu0 %vm905_vm4, %v1518_v52  ;;  %1730 = vmatmul.mubr.msk.f32.vlgmr.msra.gmra.mrb[10].mxu1 %vm905_vm4, %v1518_v52 }
 0x557   :  { %v1588_v53 = vpop.f32.mrb[10].mxu0  ;;  %v1659_v57 = vpop.f32.mrb[10].mxu1 }
 0x558   :  { %v1589_v0 = vadd.f32 %v1588_v53, %v3687_v63  ;;  %v1660_v6 = vadd.f32 %v1659_v57, %v3691_v1  ;;  %v1590_v38 = vpop.f32.mrb[11].mxu0  ;;  %v1661_v20 = vpop.f32.mrb[11].mxu1 }
 0x559   :  { %v1591_v19 = vadd.f32 %v1590_v38, %v3695_v15  ;;  %v1662_v24 = vadd.f32 %v1661_v20, %v3699_v18 }
 0x55a   :  { %v1664_v34 = vmax.f32 %v1589_v0, 0.0  ;;  %v1666_v47 = vmax.f32 %v1660_v6, 0.0 }
 0x55b   :  { %v1665_v36 = vmax.f32 %v1591_v19, 0.0  ;;  %v1667_v42 = vmax.f32 %v1662_v24, 0.0 }
 0x55c   :  { %v1668_v49 = vmul.f32 %v1664_v34, %v3705_v54  ;;  %v1695_v50 = vmul.f32 %v1664_v34, %v1664_v34  ;;  %v1670_v14 = vmul.f32 %v1666_v47, %v3707_v59  ;;  %v1697_v25 = vmul.f32 %v1666_v47, %v1666_v47 }
 0x55d   :  { %v1669_v63 = vmul.f32 %v1665_v36, %v3709_v11  ;;  %v1696_v61 = vmul.f32 %v1665_v36, %v1665_v36  ;;  %v1671_v46 = vmul.f32 %v1667_v42, %v3711_v13  ;;  %v1698_v60 = vmul.f32 %v1667_v42, %v1667_v42 }
 0x55e   :  { %v1673_v1 = vsel %vm1672_vm5, %v1668_v49, 0.0  ;;  %v1699_v43 = vsel %vm1672_vm5, %v1695_v50, 0.0  ;;  %v1702_v4 = vsel %vm1672_vm5, %v1697_v25, 0.0  ;;  %v1676_v59 = vsel %vm1672_vm5, %v1670_v14, 0.0 }
 0x55f   :  { %v1674_v15 = vsel %vm1672_vm5, %v1669_v63, 0.0  ;;  %v1700_v18 = vsel %vm1672_vm5, %v1696_v61, 0.0  ;;  %v1704_v23 = vsel %vm1672_vm5, %v1698_v60, 0.0  ;;  %v1678_v28 = vsel %vm1672_vm5, %v1671_v46, 0.0 }
 0x560   :  { %v1701_v9 = vadd.f32 %v1700_v18, %v1699_v43  ;;  %v1675_v54 = vadd.f32 %v1674_v15, %v1673_v1 }
 0x562   :  { %v1703_v48 = vadd.f32 %v1702_v4, %v1701_v9  ;;  %v1677_v11 = vadd.f32 %v1676_v59, %v1675_v54 }
 0x564   :  { %v1705_v5 = vadd.f32 %v1704_v23, %v1703_v48  ;;  %v1679_v32 = vadd.f32 %v1678_v28, %v1677_v11 }
 0x566   :  { %1706 = vadd.xlane.f32.xlu1 %v1705_v5  ;;  %1680 = vadd.xlane.f32.xlu0 %v1679_v32 }
 0x5f3   :  { %v1707_v37 = vpop.xlane.xlu1 %1706  ;;  %v1681_v2 = vpop.xlane.xlu0 %1680 }
 0x5f4   :  { %v1708_v13 = vmul.f32 %v1707_v37, %v1694_v30 }
 0x5f6   :  { %v1709_v33 = vmax.f32 %v1708_v13, 1e-12 }
 0x5f8   :  { %2568 = vrsqrt.f32 %v1709_v33 }
 0x602   :  { %v2569_v55 = vpop.eup %2568 }
 0x603   :  { %v1711_v41 = vmul.f32 %v2569_v55, %v1681_v2 }
 0x605   :  { %1712 = vst [vmem:[%s3773_s10] sm:$0x3] %v1711_v41 }
 0x606   :  { %1717 = vsyncpa [#allocation3], 1 }

</bundles_post_ra>
